<compile_context>
chip_gen: v7x
topology: tpu7x:2x2x1
jax: 0.10.0
libtpu: 0.0.40
codegen_flags: <defaults>
</compile_context>

<pallas_src>
import functools

import jax
import jax.numpy as jnp
from jax import lax
from jax.experimental import pallas as pl
from jax.experimental.pallas import tpu as pltpu


_VMEM_LIMIT = 48 * 1024 * 1024   # explicit scoped-VMEM budget, < physical on v5e/v6e/v7x


# ----------------------------------------------------------------------------
# Kernel 1: multi-head attention message (MultiHeadedAttention.forward)
# ----------------------------------------------------------------------------
def attn_message_kernel(x_ref, s_ref, wq_ref, bq_ref, wk_ref, bk_ref,
                        wv_ref, bv_ref, wm_ref, bm_ref, o_ref,
                        *, bb, heads, dim, topk):
    N = x_ref.shape[1]
    M = s_ref.shape[1]
    D = x_ref.shape[2]
    scale = 1.0 / (dim ** 0.5)

    # Fold the bb batch elements of this grid step into the row dimension.
    x = x_ref[...].reshape(bb * N, D)
    src = s_ref[...].reshape(bb * M, D)
    xb = x.astype(jnp.bfloat16)
    sb = src.astype(jnp.bfloat16)

    # Fused lane-dense q/k/v projections (bf16 MXU operands, f32 accumulation).
    q = jnp.dot(xb, wq_ref[...], preferred_element_type=jnp.float32) + bq_ref[...]
    k = jnp.dot(sb, wk_ref[...], preferred_element_type=jnp.float32) + bk_ref[...]
    v = jnp.dot(sb, wv_ref[...], preferred_element_type=jnp.float32) + bv_ref[...]

    qb = (q * scale).astype(jnp.bfloat16)   # fold 1/sqrt(dim) into q
    kb = k.astype(jnp.bfloat16)
    vb = v.astype(jnp.bfloat16)

    # Per-(batch, head) scores, contracting the last axes of both operands
    # (no explicit K transpose), stacked along sublanes into one tile so the
    # top-k mask + softmax run once over all heads.
    # TODO(synk): at SuperGlue scale (N=M~2k) this (H*N, M) score tile should be flash-tiled over M for v7x's 64 MiB VMEM.
    dn = (((1,), (1,)), ((), ()))
    s_parts = []
    for b in range(bb):
        for h in range(heads):
            qh = qb[b * N:(b + 1) * N, h * dim:(h + 1) * dim]
            kh = kb[b * M:(b + 1) * M, h * dim:(h + 1) * dim]
            s_parts.append(lax.dot_general(qh, kh, dn,
                                           preferred_element_type=jnp.float32))
    s = s_parts[0] if len(s_parts) == 1 else jnp.concatenate(s_parts, axis=0)

    if topk is not None and topk < M:
        # dynamic_attention == masked softmax with -inf outside the top-k.
        # TODO(synk): torch.topk tie-breaking and its float64 prob buffer are not reproduced (exact ties at the k-th score keep all tied columns; math stays f32).
        rem = s
        kth = jnp.max(rem, axis=-1, keepdims=True)
        for _ in range(topk - 1):
            rem = jnp.where(rem >= kth, -jnp.inf, rem)
            kth = jnp.max(rem, axis=-1, keepdims=True)
        s = jnp.where(s >= kth, s, -jnp.inf)

    # Softmax over M in f32; normalisation through the EUP approx reciprocal.
    m_max = jnp.max(s, axis=-1, keepdims=True)
    prob = jnp.exp(s - m_max)
    prob = prob * pl.reciprocal(jnp.sum(prob, axis=-1, keepdims=True), approx=True)
    # TODO(synk): torch stashes `prob` on layer.attn.prob (python side effect); not returned here.

    # PV per (batch, head), reassembled into a lane-dense (bb*N, D) tile, then
    # a single fused (D, D) merge matmul instead of H accumulating dots.
    brows = []
    for b in range(bb):
        cols = []
        for h in range(heads):
            r = b * heads + h
            ph = prob[r * N:(r + 1) * N, :].astype(jnp.bfloat16)
            vh = vb[b * M:(b + 1) * M, h * dim:(h + 1) * dim]
            cols.append(jnp.dot(ph, vh, preferred_element_type=jnp.float32))
        brows.append(cols[0] if len(cols) == 1 else jnp.concatenate(cols, axis=-1))
    o_all = brows[0] if len(brows) == 1 else jnp.concatenate(brows, axis=0)

    msg = jnp.dot(o_all.astype(jnp.bfloat16), wm_ref[...],
                  preferred_element_type=jnp.float32) + bm_ref[...]
    o_ref[...] = msg.reshape(bb, N, D).astype(o_ref.dtype)


def _pick_batch_block(B, N):
    """Fold batch elements per grid step until rows are MXU-dense (>=128)."""
    bb = 1
    for cand in range(1, B + 1):
        if B % cand:
            continue
        bb = cand
        if cand * N >= 128:
            break
    return bb


def attn_message(x, src, params, topk):
    B, N, D = x.shape
    M = src.shape[1]
    heads = params['heads']
    dim = D // heads
    bb = _pick_batch_block(B, N)
    kernel = functools.partial(attn_message_kernel, bb=bb, heads=heads,
                               dim=dim, topk=topk)
    flops = 2 * B * (2 * N + 2 * M) * D * D + 4 * B * N * M * D
    cost = pl.CostEstimate(
        flops=flops,
        transcendentals=B * heads * N * M,
        bytes_accessed=4 * B * D * (2 * N + M) + 8 * D * D + 16 * D)
    return pl.pallas_call(
        kernel,
        out_shape=jax.ShapeDtypeStruct((B, N, D), jnp.float32),
        grid=(B // bb,),
        in_specs=[
            pl.BlockSpec((bb, N, D), lambda i: (i, 0, 0)),
            pl.BlockSpec((bb, M, D), lambda i: (i, 0, 0)),
            pl.BlockSpec((D, D), lambda i: (0, 0)),    # wq (head-grouped cols)
            pl.BlockSpec((1, D), lambda i: (0, 0)),    # bq
            pl.BlockSpec((D, D), lambda i: (0, 0)),    # wk
            pl.BlockSpec((1, D), lambda i: (0, 0)),    # bk
            pl.BlockSpec((D, D), lambda i: (0, 0)),    # wv
            pl.BlockSpec((1, D), lambda i: (0, 0)),    # bv
            pl.BlockSpec((D, D), lambda i: (0, 0)),    # wm (head-grouped rows)
            pl.BlockSpec((1, D), lambda i: (0, 0)),    # bm
        ],
        out_specs=pl.BlockSpec((bb, N, D), lambda i: (i, 0, 0)),
        compiler_params=pltpu.CompilerParams(
            dimension_semantics=("parallel",),
            vmem_limit_bytes=_VMEM_LIMIT),
        cost_estimate=cost,
    )(x, src, params['wq'], params['bq'], params['wk'], params['bk'],
      params['wv'], params['bv'], params['wm'], params['bm'])


# ----------------------------------------------------------------------------
# Kernel 2: MLP([2D, 2D, D]) on concat([x, message]) + residual add
# ----------------------------------------------------------------------------
def mlp_residual_kernel(x_ref, m_ref, w1x_ref, w1m_ref, b1_ref, g_ref,
                        beta_ref, w2_ref, b2_ref, o_ref, sum_ref, ssq_ref,
                        *, inv_rows, eps):
    phase = pl.program_id(0)     # 0: accumulate BN statistics, 1: apply
    tile = pl.program_id(1)

    x = x_ref[...]
    msg = m_ref[...]
    # First conv on concat([x, msg], channels) without the lane concat:
    # y = x @ w1[:D] + msg @ w1[D:] + b1 (bf16 MXU operands, f32 accumulation).
    y = (jnp.dot(x.astype(jnp.bfloat16), w1x_ref[...],
                 preferred_element_type=jnp.float32) +
         jnp.dot(msg.astype(jnp.bfloat16), w1m_ref[...],
                 preferred_element_type=jnp.float32) + b1_ref[...])

    @pl.when(jnp.logical_and(phase == 0, tile == 0))
    def _():
        sum_ref[...] = jnp.zeros_like(sum_ref)
        ssq_ref[...] = jnp.zeros_like(ssq_ref)

    @pl.when(phase == 0)
    def _():
        sum_ref[...] += jnp.sum(y, axis=0, keepdims=True)
        ssq_ref[...] += jnp.sum(y * y, axis=0, keepdims=True)

    @pl.when(phase == 1)
    def _():
        # BatchNorm1d training mode: biased batch statistics over (batch*points).
        # TODO(synk): eval-mode running stats / running-buffer updates are not emulated.
        mean = sum_ref[...] * inv_rows
        var = jnp.maximum(ssq_ref[...] * inv_rows - mean * mean, 0.0)
        yhat = (y - mean) * lax.rsqrt(var + eps)
        z = jnp.maximum(g_ref[...] * yhat + beta_ref[...], 0.0)     # affine + ReLU
        delta = jnp.dot(z.astype(jnp.bfloat16), w2_ref[...],
                        preferred_element_type=jnp.float32) + b2_ref[...]
        o_ref[...] = (x + delta).astype(o_ref.dtype)                # GNN residual
    # Note: output blocks written back during phase 0 carry scratch garbage but
    # are fully rewritten by the phase-1 sweep (revisit is correctness-safe).


def _pick_row_tile(rows):
    for cand in (1024, 512, 256, 128, 64, 32, 16, 8):
        if rows % cand == 0:
            return cand
    return rows


def mlp_residual(x, msg, params):
    B, N, D = x.shape
    rows = B * N
    D2 = 2 * D
    tile = _pick_row_tile(rows)
    n_tiles = rows // tile
    x2 = x.reshape(rows, D)
    m2 = msg.reshape(rows, D)
    kernel = functools.partial(mlp_residual_kernel, inv_rows=1.0 / rows, eps=1e-5)
    cost = pl.CostEstimate(
        flops=20 * rows * D * D,
        transcendentals=2 * D * n_tiles,
        bytes_accessed=4 * rows * D * 6 + 2 * (4 * D * D + 2 * D * D))
    out = pl.pallas_call(
        kernel,
        out_shape=jax.ShapeDtypeStruct((rows, D), jnp.float32),
        grid=(2, n_tiles),
        in_specs=[
            pl.BlockSpec((tile, D), lambda ph, t: (t, 0)),
            pl.BlockSpec((tile, D), lambda ph, t: (t, 0)),
            pl.BlockSpec((D, D2), lambda ph, t: (0, 0)),   # w1[:D].T
            pl.BlockSpec((D, D2), lambda ph, t: (0, 0)),   # w1[D:].T
            pl.BlockSpec((1, D2), lambda ph, t: (0, 0)),   # b1
            pl.BlockSpec((1, D2), lambda ph, t: (0, 0)),   # BN gamma
            pl.BlockSpec((1, D2), lambda ph, t: (0, 0)),   # BN beta
            pl.BlockSpec((D2, D), lambda ph, t: (0, 0)),   # w2
            pl.BlockSpec((1, D), lambda ph, t: (0, 0)),    # b2
        ],
        out_specs=pl.BlockSpec((tile, D), lambda ph, t: (t, 0)),
        scratch_shapes=[pltpu.VMEM((1, D2), jnp.float32),
                        pltpu.VMEM((1, D2), jnp.float32)],
        compiler_params=pltpu.CompilerParams(
            # Both axes sequential: the global BN statistics must be complete
            # before the apply pass (no megacore split of the stats).
            dimension_semantics=("arbitrary", "arbitrary"),
            vmem_limit_bytes=_VMEM_LIMIT),
        cost_estimate=cost,
    )(x2, m2, params['w1x'], params['w1m'], params['b1'], params['gamma'],
      params['beta'], params['w2'], params['b2'])
    return out.reshape(B, N, D)


# ----------------------------------------------------------------------------
# Glue: AttentionalPropagation / AttentionalGNN forward
# ----------------------------------------------------------------------------
def half_layer(desc, src, params, topk):
    message = attn_message(desc, src, params, topk)
    return mlp_residual(desc, message, params)


def attentional_gnn_forward(desc0, desc1, layer_params, names, k_list, L):
    """desc0, desc1: (B, D, N) exactly like the PyTorch Conv1d inputs."""
    d0 = jnp.transpose(desc0, (0, 2, 1))   # -> (B, N, D) channels-last
    d1 = jnp.transpose(desc1, (0, 2, 1))
    for i, (p, name) in enumerate(zip(layer_params, names)):
        s0, s1 = (d1, d0) if name == 'cross' else (d0, d1)
        if i > 2 * L - 1 - len(k_list):
            k = k_list[i - 2 * L + len(k_list)]
        else:
            k = None
        nd0 = half_layer(d0, s0, p, k)
        nd1 = half_layer(d1, s1, p, k)
        d0, d1 = nd0, nd1
    return jnp.transpose(d0, (0, 2, 1)), jnp.transpose(d1, (0, 2, 1))


# ----------------------------------------------------------------------------
# Deterministic parameter construction (synthetic; matches __init__ shapes)
# ----------------------------------------------------------------------------
def init_layer_params(key, d_model, heads):
    dim = d_model // heads
    d2 = 2 * d_model
    ks = jax.random.split(key, 13)

    def norm(k, shape, scale):
        return jax.random.normal(k, shape, jnp.float32) * scale

    # Synthetic torch-layout Conv1d(kernel=1) weights: (out_channels, in_channels).
    wq_t = norm(ks[0], (d_model, d_model), 0.15); bq = norm(ks[1], (d_model,), 0.05)
    wk_t = norm(ks[2], (d_model, d_model), 0.15); bk = norm(ks[3], (d_model,), 0.05)
    wv_t = norm(ks[4], (d_model, d_model), 0.15); bv = norm(ks[5], (d_model,), 0.05)
    wm_t = norm(ks[6], (d_model, d_model), 0.15); bm = norm(ks[7], (d_model,), 0.05)
    w1_t = norm(ks[8], (d2, d2), 0.1); b1 = norm(ks[9], (d2,), 0.05)
    gamma = 1.0 + norm(ks[10], (d2,), 0.05)      # BatchNorm1d weight
    beta = norm(ks[11], (d2,), 0.05)             # BatchNorm1d bias
    w2_t = norm(ks[12], (d_model, d2), 0.1)
    b2 = jnp.zeros((d_model,), jnp.float32)      # nn.init.constant_(mlp[-1].bias, 0.0)

    # Head-grouped channel permutation: grouped col h*dim+d  <-  torch conv
    # channel d*heads+h (from the .view(B, dim, heads, N) head split).
    perm = jnp.array([d * heads + h for h in range(heads) for d in range(dim)],
                     jnp.int32)

    def proj(w_t, b):     # right-multiply weight with head-grouped output cols
        return (w_t.T[:, perm]).astype(jnp.bfloat16), b[perm].reshape(1, d_model)

    wq, bqg = proj(wq_t, bq)
    wk, bkg = proj(wk_t, bk)
    wv, bvg = proj(wv_t, bv)
    wm = (wm_t.T[perm, :]).astype(jnp.bfloat16)  # head-grouped *input* rows

    return {
        'heads': heads,
        'wq': wq, 'bq': bqg, 'wk': wk, 'bk': bkg, 'wv': wv, 'bv': bvg,
        'wm': wm, 'bm': bm.reshape(1, d_model),
        'w1x': (w1_t[:, :d_model].T).astype(jnp.bfloat16),
        'w1m': (w1_t[:, d_model:].T).astype(jnp.bfloat16),
        'b1': b1.reshape(1, d2),
        'gamma': gamma.reshape(1, d2), 'beta': beta.reshape(1, d2),
        'w2': (w2_t.T).astype(jnp.bfloat16), 'b2': b2.reshape(1, d_model),
    }


# ----------------------------------------------------------------------------
# Pure-JAX reference (mirrors the kernels' bf16 operand casts; exact division)
# ----------------------------------------------------------------------------
def _ref_attn_message(x, src, params, topk):
    heads = params['heads']
    B, N, D = x.shape
    M = src.shape[1]
    dim = D // heads
    scale = 1.0 / (dim ** 0.5)
    xb = x.astype(jnp.bfloat16)
    sb = src.astype(jnp.bfloat16)
    q = jnp.dot(xb, params['wq'], preferred_element_type=jnp.float32) + params['bq']
    k = jnp.dot(sb, params['wk'], preferred_element_type=jnp.float32) + params['bk']
    v = jnp.dot(sb, params['wv'], preferred_element_type=jnp.float32) + params['bv']
    qb = (q * scale).astype(jnp.bfloat16).reshape(B, N, heads, dim)
    kb = k.astype(jnp.bfloat16).reshape(B, M, heads, dim)
    vb = v.astype(jnp.bfloat16).reshape(B, M, heads, dim)
    s = jnp.einsum('bnhd,bmhd->bhnm', qb, kb, preferred_element_type=jnp.float32)
    if topk is not None and topk < M:
        rem = s
        kth = jnp.max(rem, axis=-1, keepdims=True)
        for _ in range(topk - 1):
            rem = jnp.where(rem >= kth, -jnp.inf, rem)
            kth = jnp.max(rem, axis=-1, keepdims=True)
        s = jnp.where(s >= kth, s, -jnp.inf)
    prob = jnp.exp(s - jnp.max(s, axis=-1, keepdims=True))
    prob = prob / jnp.sum(prob, axis=-1, keepdims=True)
    o = jnp.einsum('bhnm,bmhd->bnhd', prob.astype(jnp.bfloat16), vb,
                   preferred_element_type=jnp.float32).reshape(B, N, D)
    return jnp.dot(o.astype(jnp.bfloat16), params['wm'],
                   preferred_element_type=jnp.float32) + params['bm']


def _ref_mlp_residual(x, msg, params):
    B, N, D = x.shape
    x2 = x.reshape(B * N, D)
    m2 = msg.reshape(B * N, D)
    y = (jnp.dot(x2.astype(jnp.bfloat16), params['w1x'],
                 preferred_element_type=jnp.float32) +
         jnp.dot(m2.astype(jnp.bfloat16), params['w1m'],
                 preferred_element_type=jnp.float32) + params['b1'])
    mean = jnp.mean(y, axis=0, keepdims=True)
    var = jnp.maximum(jnp.mean(y * y, axis=0, keepdims=True) - mean * mean, 0.0)
    yhat = (y - mean) * lax.rsqrt(var + 1e-5)
    z = jnp.maximum(params['gamma'] * yhat + params['beta'], 0.0)
    delta = jnp.dot(z.astype(jnp.bfloat16), params['w2'],
                    preferred_element_type=jnp.float32) + params['b2']
    return (x2 + delta).reshape(B, N, D)


def _ref_gnn_forward(desc0, desc1, layer_params, names, k_list, L):
    d0 = jnp.transpose(desc0, (0, 2, 1))
    d1 = jnp.transpose(desc1, (0, 2, 1))
    for i, (p, name) in enumerate(zip(layer_params, names)):
        s0, s1 = (d1, d0) if name == 'cross' else (d0, d1)
        k = k_list[i - 2 * L + len(k_list)] if i > 2 * L - 1 - len(k_list) else None
        nd0 = _ref_mlp_residual(d0, _ref_attn_message(d0, s0, p, k), p)
        nd1 = _ref_mlp_residual(d1, _ref_attn_message(d1, s1, p, k), p)
        d0, d1 = nd0, nd1
    return jnp.transpose(d0, (0, 2, 1)), jnp.transpose(d1, (0, 2, 1))


if __name__ == "__main__":
    B, D, N, heads = 2, 32, 16, 4
    names = ['self', 'cross', 'self', 'cross']
    L = len(names) // 2
    k_list = [6]            # last layer uses dynamic (top-k) attention, k=6

    key = jax.random.PRNGKey(0)
    kd0, kd1, kp = jax.random.split(key, 3)
    desc0 = jax.random.normal(kd0, (B, D, N), jnp.float32)
    desc1 = jax.random.normal(kd1, (B, D, N), jnp.float32)
    layer_params = [init_layer_params(k, D, heads)
                    for k in jax.random.split(kp, len(names))]

    out0, out1 = attentional_gnn_forward(desc0, desc1, layer_params,
                                         names, k_list, L)
    jax.block_until_ready((out0, out1))
    assert out0.shape == (B, D, N) and out1.shape == (B, D, N)
    assert jnp.all(jnp.isfinite(out0)) and jnp.all(jnp.isfinite(out1))

    # Correctness vs a pure-JAX reference with identical bf16 operand casts
    # (loose tolerance covers the EUP approximate softmax reciprocal).
    ref0, ref1 = _ref_gnn_forward(desc0, desc1, layer_params, names, k_list, L)
    err = max(float(jnp.max(jnp.abs(out0 - ref0))),
              float(jnp.max(jnp.abs(out1 - ref1))))
    assert err < 2e-1, f"mismatch vs reference: {err}"
    print("KERNEL_OK")
</pallas_src>

<mosaic_0001>
module attributes {stable_mosaic.version = 11 : i64} {
  func.func @attn_message_kernel(%arg0: i32, %arg1: memref<2x16x32xf32, #tpu.memory_space<vmem>>, %arg2: memref<2x16x32xf32, #tpu.memory_space<vmem>>, %arg3: memref<32x32xbf16, #tpu.memory_space<vmem>>, %arg4: memref<1x32xf32, #tpu.memory_space<vmem>>, %arg5: memref<32x32xbf16, #tpu.memory_space<vmem>>, %arg6: memref<1x32xf32, #tpu.memory_space<vmem>>, %arg7: memref<32x32xbf16, #tpu.memory_space<vmem>>, %arg8: memref<1x32xf32, #tpu.memory_space<vmem>>, %arg9: memref<32x32xbf16, #tpu.memory_space<vmem>>, %arg10: memref<1x32xf32, #tpu.memory_space<vmem>>, %arg11: memref<2x16x32xf32, #tpu.memory_space<vmem>>) attributes {dimension_semantics = [#tpu.dimension_semantics<parallel>], iteration_bounds = array<i64: 1>, scalar_prefetch = 0 : i64, scratch_operands = 0 : i64, tpu.core_type = #tpu.core_type<tc>, window_params = [{transform_indices = @transform_0, window_bounds = array<i64: 2, 16, 32>}, {transform_indices = @transform_1, window_bounds = array<i64: 2, 16, 32>}, {pipeline_mode = #tpu.pipeline_mode<synchronous>, transform_indices = @transform_2, window_bounds = array<i64: 32, 32>}, {pipeline_mode = #tpu.pipeline_mode<synchronous>, transform_indices = @transform_3, window_bounds = array<i64: 1, 32>}, {pipeline_mode = #tpu.pipeline_mode<synchronous>, transform_indices = @transform_4, window_bounds = array<i64: 32, 32>}, {pipeline_mode = #tpu.pipeline_mode<synchronous>, transform_indices = @transform_5, window_bounds = array<i64: 1, 32>}, {pipeline_mode = #tpu.pipeline_mode<synchronous>, transform_indices = @transform_6, window_bounds = array<i64: 32, 32>}, {pipeline_mode = #tpu.pipeline_mode<synchronous>, transform_indices = @transform_7, window_bounds = array<i64: 1, 32>}, {pipeline_mode = #tpu.pipeline_mode<synchronous>, transform_indices = @transform_8, window_bounds = array<i64: 32, 32>}, {pipeline_mode = #tpu.pipeline_mode<synchronous>, transform_indices = @transform_9, window_bounds = array<i64: 1, 32>}, {transform_indices = @transform_10, window_bounds = array<i64: 2, 16, 32>}]} {
    %c0 = arith.constant 0 : index
    %c0_0 = arith.constant 0 : index
    %c0_1 = arith.constant 0 : index
    %0 = vector.load %arg1[%c0, %c0_0, %c0_1] : memref<2x16x32xf32, #tpu.memory_space<vmem>>, vector<2x16x32xf32>
    %1 = vector.shape_cast %0 : vector<2x16x32xf32> to vector<32x32xf32>
    %c0_2 = arith.constant 0 : index
    %c0_3 = arith.constant 0 : index
    %c0_4 = arith.constant 0 : index
    %2 = vector.load %arg2[%c0_2, %c0_3, %c0_4] : memref<2x16x32xf32, #tpu.memory_space<vmem>>, vector<2x16x32xf32>
    %3 = vector.shape_cast %2 : vector<2x16x32xf32> to vector<32x32xf32>
    %4 = arith.truncf %1 : vector<32x32xf32> to vector<32x32xbf16>
    %5 = arith.truncf %3 : vector<32x32xf32> to vector<32x32xbf16>
    %c0_5 = arith.constant 0 : index
    %c0_6 = arith.constant 0 : index
    %6 = vector.load %arg3[%c0_5, %c0_6] : memref<32x32xbf16, #tpu.memory_space<vmem>>, vector<32x32xbf16>
    %cst = arith.constant dense<0.000000e+00> : vector<32x32xf32>
    %7 = tpu.matmul %4, %6, %cst {dimension_numbers = #tpu.dot_dimension_numbers<[1], [0], [0], [1], [0, 0, 1, 1], [], []>} : vector<32x32xbf16>, vector<32x32xbf16>, vector<32x32xf32> -> vector<32x32xf32>
    %c0_7 = arith.constant 0 : index
    %c0_8 = arith.constant 0 : index
    %8 = vector.load %arg4[%c0_7, %c0_8] : memref<1x32xf32, #tpu.memory_space<vmem>>, vector<1x32xf32>
    %9 = vector.broadcast %8 : vector<1x32xf32> to vector<32x32xf32>
    %10 = arith.addf %7, %9 : vector<32x32xf32>
    %c0_9 = arith.constant 0 : index
    %c0_10 = arith.constant 0 : index
    %11 = vector.load %arg5[%c0_9, %c0_10] : memref<32x32xbf16, #tpu.memory_space<vmem>>, vector<32x32xbf16>
    %cst_11 = arith.constant dense<0.000000e+00> : vector<32x32xf32>
    %12 = tpu.matmul %5, %11, %cst_11 {dimension_numbers = #tpu.dot_dimension_numbers<[1], [0], [0], [1], [0, 0, 1, 1], [], []>} : vector<32x32xbf16>, vector<32x32xbf16>, vector<32x32xf32> -> vector<32x32xf32>
    %c0_12 = arith.constant 0 : index
    %c0_13 = arith.constant 0 : index
    %13 = vector.load %arg6[%c0_12, %c0_13] : memref<1x32xf32, #tpu.memory_space<vmem>>, vector<1x32xf32>
    %14 = vector.broadcast %13 : vector<1x32xf32> to vector<32x32xf32>
    %15 = arith.addf %12, %14 : vector<32x32xf32>
    %c0_14 = arith.constant 0 : index
    %c0_15 = arith.constant 0 : index
    %16 = vector.load %arg7[%c0_14, %c0_15] : memref<32x32xbf16, #tpu.memory_space<vmem>>, vector<32x32xbf16>
    %cst_16 = arith.constant dense<0.000000e+00> : vector<32x32xf32>
    %17 = tpu.matmul %5, %16, %cst_16 {dimension_numbers = #tpu.dot_dimension_numbers<[1], [0], [0], [1], [0, 0, 1, 1], [], []>} : vector<32x32xbf16>, vector<32x32xbf16>, vector<32x32xf32> -> vector<32x32xf32>
    %c0_17 = arith.constant 0 : index
    %c0_18 = arith.constant 0 : index
    %18 = vector.load %arg8[%c0_17, %c0_18] : memref<1x32xf32, #tpu.memory_space<vmem>>, vector<1x32xf32>
    %19 = vector.broadcast %18 : vector<1x32xf32> to vector<32x32xf32>
    %20 = arith.addf %17, %19 : vector<32x32xf32>
    %cst_19 = arith.constant 0.353553385 : f32
    %21 = vector.broadcast %cst_19 : f32 to vector<32x32xf32>
    %22 = arith.mulf %10, %21 : vector<32x32xf32>
    %23 = arith.truncf %22 : vector<32x32xf32> to vector<32x32xbf16>
    %24 = arith.truncf %15 : vector<32x32xf32> to vector<32x32xbf16>
    %25 = arith.truncf %20 : vector<32x32xf32> to vector<32x32xbf16>
    %26 = vector.extract_strided_slice %23 {offsets = [0, 0], sizes = [16, 8], strides = [1, 1]} : vector<32x32xbf16> to vector<16x8xbf16>
    %27 = vector.extract_strided_slice %24 {offsets = [0, 0], sizes = [16, 8], strides = [1, 1]} : vector<32x32xbf16> to vector<16x8xbf16>
    %cst_20 = arith.constant dense<0.000000e+00> : vector<16x16xf32>
    %28 = tpu.matmul %26, %27, %cst_20 {dimension_numbers = #tpu.dot_dimension_numbers<[1], [1], [0], [0], [0, 0, 1, 0], [], []>} : vector<16x8xbf16>, vector<16x8xbf16>, vector<16x16xf32> -> vector<16x16xf32>
    %29 = vector.extract_strided_slice %23 {offsets = [0, 8], sizes = [16, 8], strides = [1, 1]} : vector<32x32xbf16> to vector<16x8xbf16>
    %30 = vector.extract_strided_slice %24 {offsets = [0, 8], sizes = [16, 8], strides = [1, 1]} : vector<32x32xbf16> to vector<16x8xbf16>
    %cst_21 = arith.constant dense<0.000000e+00> : vector<16x16xf32>
    %31 = tpu.matmul %29, %30, %cst_21 {dimension_numbers = #tpu.dot_dimension_numbers<[1], [1], [0], [0], [0, 0, 1, 0], [], []>} : vector<16x8xbf16>, vector<16x8xbf16>, vector<16x16xf32> -> vector<16x16xf32>
    %32 = vector.extract_strided_slice %23 {offsets = [0, 16], sizes = [16, 8], strides = [1, 1]} : vector<32x32xbf16> to vector<16x8xbf16>
    %33 = vector.extract_strided_slice %24 {offsets = [0, 16], sizes = [16, 8], strides = [1, 1]} : vector<32x32xbf16> to vector<16x8xbf16>
    %cst_22 = arith.constant dense<0.000000e+00> : vector<16x16xf32>
    %34 = tpu.matmul %32, %33, %cst_22 {dimension_numbers = #tpu.dot_dimension_numbers<[1], [1], [0], [0], [0, 0, 1, 0], [], []>} : vector<16x8xbf16>, vector<16x8xbf16>, vector<16x16xf32> -> vector<16x16xf32>
    %35 = vector.extract_strided_slice %23 {offsets = [0, 24], sizes = [16, 8], strides = [1, 1]} : vector<32x32xbf16> to vector<16x8xbf16>
    %36 = vector.extract_strided_slice %24 {offsets = [0, 24], sizes = [16, 8], strides = [1, 1]} : vector<32x32xbf16> to vector<16x8xbf16>
    %cst_23 = arith.constant dense<0.000000e+00> : vector<16x16xf32>
    %37 = tpu.matmul %35, %36, %cst_23 {dimension_numbers = #tpu.dot_dimension_numbers<[1], [1], [0], [0], [0, 0, 1, 0], [], []>} : vector<16x8xbf16>, vector<16x8xbf16>, vector<16x16xf32> -> vector<16x16xf32>
    %38 = vector.extract_strided_slice %23 {offsets = [16, 0], sizes = [16, 8], strides = [1, 1]} : vector<32x32xbf16> to vector<16x8xbf16>
    %39 = vector.extract_strided_slice %24 {offsets = [16, 0], sizes = [16, 8], strides = [1, 1]} : vector<32x32xbf16> to vector<16x8xbf16>
    %cst_24 = arith.constant dense<0.000000e+00> : vector<16x16xf32>
    %40 = tpu.matmul %38, %39, %cst_24 {dimension_numbers = #tpu.dot_dimension_numbers<[1], [1], [0], [0], [0, 0, 1, 0], [], []>} : vector<16x8xbf16>, vector<16x8xbf16>, vector<16x16xf32> -> vector<16x16xf32>
    %41 = vector.extract_strided_slice %23 {offsets = [16, 8], sizes = [16, 8], strides = [1, 1]} : vector<32x32xbf16> to vector<16x8xbf16>
    %42 = vector.extract_strided_slice %24 {offsets = [16, 8], sizes = [16, 8], strides = [1, 1]} : vector<32x32xbf16> to vector<16x8xbf16>
    %cst_25 = arith.constant dense<0.000000e+00> : vector<16x16xf32>
    %43 = tpu.matmul %41, %42, %cst_25 {dimension_numbers = #tpu.dot_dimension_numbers<[1], [1], [0], [0], [0, 0, 1, 0], [], []>} : vector<16x8xbf16>, vector<16x8xbf16>, vector<16x16xf32> -> vector<16x16xf32>
    %44 = vector.extract_strided_slice %23 {offsets = [16, 16], sizes = [16, 8], strides = [1, 1]} : vector<32x32xbf16> to vector<16x8xbf16>
    %45 = vector.extract_strided_slice %24 {offsets = [16, 16], sizes = [16, 8], strides = [1, 1]} : vector<32x32xbf16> to vector<16x8xbf16>
    %cst_26 = arith.constant dense<0.000000e+00> : vector<16x16xf32>
    %46 = tpu.matmul %44, %45, %cst_26 {dimension_numbers = #tpu.dot_dimension_numbers<[1], [1], [0], [0], [0, 0, 1, 0], [], []>} : vector<16x8xbf16>, vector<16x8xbf16>, vector<16x16xf32> -> vector<16x16xf32>
    %47 = vector.extract_strided_slice %23 {offsets = [16, 24], sizes = [16, 8], strides = [1, 1]} : vector<32x32xbf16> to vector<16x8xbf16>
    %48 = vector.extract_strided_slice %24 {offsets = [16, 24], sizes = [16, 8], strides = [1, 1]} : vector<32x32xbf16> to vector<16x8xbf16>
    %cst_27 = arith.constant dense<0.000000e+00> : vector<16x16xf32>
    %49 = tpu.matmul %47, %48, %cst_27 {dimension_numbers = #tpu.dot_dimension_numbers<[1], [1], [0], [0], [0, 0, 1, 0], [], []>} : vector<16x8xbf16>, vector<16x8xbf16>, vector<16x16xf32> -> vector<16x16xf32>
    %50 = tpu.concatenate %28, %31, %34, %37, %40, %43, %46, %49 in 0 : vector<16x16xf32>, vector<16x16xf32>, vector<16x16xf32>, vector<16x16xf32>, vector<16x16xf32>, vector<16x16xf32>, vector<16x16xf32>, vector<16x16xf32> -> vector<128x16xf32>
    %cst_28 = arith.constant dense<0xFF800000> : vector<128xf32>
    %51 = vector.multi_reduction <maximumf>, %50, %cst_28 [1] : vector<128x16xf32> to vector<128xf32>
    %52 = vector.shape_cast %51 : vector<128xf32> to vector<128x1xf32>
    %53 = vector.broadcast %52 : vector<128x1xf32> to vector<128x16xf32>
    %54 = arith.subf %50, %53 : vector<128x16xf32>
    %55 = math.exp %54 : vector<128x16xf32>
    %cst_29 = arith.constant dense<0.000000e+00> : vector<128xf32>
    %56 = vector.multi_reduction <add>, %55, %cst_29 [1] : vector<128x16xf32> to vector<128xf32>
    %57 = vector.shape_cast %56 : vector<128xf32> to vector<128x1xf32>
    %58 = tpu.reciprocal %57 {approx = true} : vector<128x1xf32> -> vector<128x1xf32>
    %59 = vector.broadcast %58 : vector<128x1xf32> to vector<128x16xf32>
    %60 = arith.mulf %55, %59 : vector<128x16xf32>
    %61 = vector.extract_strided_slice %60 {offsets = [0, 0], sizes = [16, 16], strides = [1, 1]} : vector<128x16xf32> to vector<16x16xf32>
    %62 = arith.truncf %61 : vector<16x16xf32> to vector<16x16xbf16>
    %63 = vector.extract_strided_slice %25 {offsets = [0, 0], sizes = [16, 8], strides = [1, 1]} : vector<32x32xbf16> to vector<16x8xbf16>
    %cst_30 = arith.constant dense<0.000000e+00> : vector<16x8xf32>
    %64 = tpu.matmul %62, %63, %cst_30 {dimension_numbers = #tpu.dot_dimension_numbers<[1], [0], [0], [1], [0, 0, 1, 1], [], []>} : vector<16x16xbf16>, vector<16x8xbf16>, vector<16x8xf32> -> vector<16x8xf32>
    %65 = vector.extract_strided_slice %60 {offsets = [16, 0], sizes = [16, 16], strides = [1, 1]} : vector<128x16xf32> to vector<16x16xf32>
    %66 = arith.truncf %65 : vector<16x16xf32> to vector<16x16xbf16>
    %67 = vector.extract_strided_slice %25 {offsets = [0, 8], sizes = [16, 8], strides = [1, 1]} : vector<32x32xbf16> to vector<16x8xbf16>
    %cst_31 = arith.constant dense<0.000000e+00> : vector<16x8xf32>
    %68 = tpu.matmul %66, %67, %cst_31 {dimension_numbers = #tpu.dot_dimension_numbers<[1], [0], [0], [1], [0, 0, 1, 1], [], []>} : vector<16x16xbf16>, vector<16x8xbf16>, vector<16x8xf32> -> vector<16x8xf32>
    %69 = vector.extract_strided_slice %60 {offsets = [32, 0], sizes = [16, 16], strides = [1, 1]} : vector<128x16xf32> to vector<16x16xf32>
    %70 = arith.truncf %69 : vector<16x16xf32> to vector<16x16xbf16>
    %71 = vector.extract_strided_slice %25 {offsets = [0, 16], sizes = [16, 8], strides = [1, 1]} : vector<32x32xbf16> to vector<16x8xbf16>
    %cst_32 = arith.constant dense<0.000000e+00> : vector<16x8xf32>
    %72 = tpu.matmul %70, %71, %cst_32 {dimension_numbers = #tpu.dot_dimension_numbers<[1], [0], [0], [1], [0, 0, 1, 1], [], []>} : vector<16x16xbf16>, vector<16x8xbf16>, vector<16x8xf32> -> vector<16x8xf32>
    %73 = vector.extract_strided_slice %60 {offsets = [48, 0], sizes = [16, 16], strides = [1, 1]} : vector<128x16xf32> to vector<16x16xf32>
    %74 = arith.truncf %73 : vector<16x16xf32> to vector<16x16xbf16>
    %75 = vector.extract_strided_slice %25 {offsets = [0, 24], sizes = [16, 8], strides = [1, 1]} : vector<32x32xbf16> to vector<16x8xbf16>
    %cst_33 = arith.constant dense<0.000000e+00> : vector<16x8xf32>
    %76 = tpu.matmul %74, %75, %cst_33 {dimension_numbers = #tpu.dot_dimension_numbers<[1], [0], [0], [1], [0, 0, 1, 1], [], []>} : vector<16x16xbf16>, vector<16x8xbf16>, vector<16x8xf32> -> vector<16x8xf32>
    %77 = tpu.concatenate %64, %68, %72, %76 in 1 : vector<16x8xf32>, vector<16x8xf32>, vector<16x8xf32>, vector<16x8xf32> -> vector<16x32xf32>
    %78 = vector.extract_strided_slice %60 {offsets = [64, 0], sizes = [16, 16], strides = [1, 1]} : vector<128x16xf32> to vector<16x16xf32>
    %79 = arith.truncf %78 : vector<16x16xf32> to vector<16x16xbf16>
    %80 = vector.extract_strided_slice %25 {offsets = [16, 0], sizes = [16, 8], strides = [1, 1]} : vector<32x32xbf16> to vector<16x8xbf16>
    %cst_34 = arith.constant dense<0.000000e+00> : vector<16x8xf32>
    %81 = tpu.matmul %79, %80, %cst_34 {dimension_numbers = #tpu.dot_dimension_numbers<[1], [0], [0], [1], [0, 0, 1, 1], [], []>} : vector<16x16xbf16>, vector<16x8xbf16>, vector<16x8xf32> -> vector<16x8xf32>
    %82 = vector.extract_strided_slice %60 {offsets = [80, 0], sizes = [16, 16], strides = [1, 1]} : vector<128x16xf32> to vector<16x16xf32>
    %83 = arith.truncf %82 : vector<16x16xf32> to vector<16x16xbf16>
    %84 = vector.extract_strided_slice %25 {offsets = [16, 8], sizes = [16, 8], strides = [1, 1]} : vector<32x32xbf16> to vector<16x8xbf16>
    %cst_35 = arith.constant dense<0.000000e+00> : vector<16x8xf32>
    %85 = tpu.matmul %83, %84, %cst_35 {dimension_numbers = #tpu.dot_dimension_numbers<[1], [0], [0], [1], [0, 0, 1, 1], [], []>} : vector<16x16xbf16>, vector<16x8xbf16>, vector<16x8xf32> -> vector<16x8xf32>
    %86 = vector.extract_strided_slice %60 {offsets = [96, 0], sizes = [16, 16], strides = [1, 1]} : vector<128x16xf32> to vector<16x16xf32>
    %87 = arith.truncf %86 : vector<16x16xf32> to vector<16x16xbf16>
    %88 = vector.extract_strided_slice %25 {offsets = [16, 16], sizes = [16, 8], strides = [1, 1]} : vector<32x32xbf16> to vector<16x8xbf16>
    %cst_36 = arith.constant dense<0.000000e+00> : vector<16x8xf32>
    %89 = tpu.matmul %87, %88, %cst_36 {dimension_numbers = #tpu.dot_dimension_numbers<[1], [0], [0], [1], [0, 0, 1, 1], [], []>} : vector<16x16xbf16>, vector<16x8xbf16>, vector<16x8xf32> -> vector<16x8xf32>
    %90 = vector.extract_strided_slice %60 {offsets = [112, 0], sizes = [16, 16], strides = [1, 1]} : vector<128x16xf32> to vector<16x16xf32>
    %91 = arith.truncf %90 : vector<16x16xf32> to vector<16x16xbf16>
    %92 = vector.extract_strided_slice %25 {offsets = [16, 24], sizes = [16, 8], strides = [1, 1]} : vector<32x32xbf16> to vector<16x8xbf16>
    %cst_37 = arith.constant dense<0.000000e+00> : vector<16x8xf32>
    %93 = tpu.matmul %91, %92, %cst_37 {dimension_numbers = #tpu.dot_dimension_numbers<[1], [0], [0], [1], [0, 0, 1, 1], [], []>} : vector<16x16xbf16>, vector<16x8xbf16>, vector<16x8xf32> -> vector<16x8xf32>
    %94 = tpu.concatenate %81, %85, %89, %93 in 1 : vector<16x8xf32>, vector<16x8xf32>, vector<16x8xf32>, vector<16x8xf32> -> vector<16x32xf32>
    %95 = tpu.concatenate %77, %94 in 0 : vector<16x32xf32>, vector<16x32xf32> -> vector<32x32xf32>
    %96 = arith.truncf %95 : vector<32x32xf32> to vector<32x32xbf16>
    %c0_38 = arith.constant 0 : index
    %c0_39 = arith.constant 0 : index
    %97 = vector.load %arg9[%c0_38, %c0_39] : memref<32x32xbf16, #tpu.memory_space<vmem>>, vector<32x32xbf16>
    %cst_40 = arith.constant dense<0.000000e+00> : vector<32x32xf32>
    %98 = tpu.matmul %96, %97, %cst_40 {dimension_numbers = #tpu.dot_dimension_numbers<[1], [0], [0], [1], [0, 0, 1, 1], [], []>} : vector<32x32xbf16>, vector<32x32xbf16>, vector<32x32xf32> -> vector<32x32xf32>
    %c0_41 = arith.constant 0 : index
    %c0_42 = arith.constant 0 : index
    %99 = vector.load %arg10[%c0_41, %c0_42] : memref<1x32xf32, #tpu.memory_space<vmem>>, vector<1x32xf32>
    %100 = vector.broadcast %99 : vector<1x32xf32> to vector<32x32xf32>
    %101 = arith.addf %98, %100 : vector<32x32xf32>
    %102 = vector.shape_cast %101 : vector<32x32xf32> to vector<2x16x32xf32>
    %c0_43 = arith.constant 0 : index
    %c0_44 = arith.constant 0 : index
    %c0_45 = arith.constant 0 : index
    %103 = vector.load %arg11[%c0_43, %c0_44, %c0_45] : memref<2x16x32xf32, #tpu.memory_space<vmem>>, vector<2x16x32xf32>
    tpu.vector_store %arg11[%c0_43, %c0_44, %c0_45], %102 {strides = array<i32>} : memref<2x16x32xf32, #tpu.memory_space<vmem>>, vector<2x16x32xf32>,
    return
  }
  func.func @transform_0(%arg0: i32) -> (i32, i32, i32) {
    %c0_i32 = arith.constant 0 : i32
    %c0_i32_0 = arith.constant 0 : i32
    %c0_i32_1 = arith.constant 0 : i32
    return %arg0, %c0_i32, %c0_i32_0 : i32, i32, i32
  }
  func.func @transform_1(%arg0: i32) -> (i32, i32, i32) {
    %c0_i32 = arith.constant 0 : i32
    %c0_i32_0 = arith.constant 0 : i32
    %c0_i32_1 = arith.constant 0 : i32
    return %arg0, %c0_i32, %c0_i32_0 : i32, i32, i32
  }
  func.func @transform_2(%arg0: i32) -> (i32, i32) {
    %c0_i32 = arith.constant 0 : i32
    %c0_i32_0 = arith.constant 0 : i32
    %c0_i32_1 = arith.constant 0 : i32
    return %c0_i32, %c0_i32_0 : i32, i32
  }
  func.func @transform_3(%arg0: i32) -> (i32, i32) {
    %c0_i32 = arith.constant 0 : i32
    %c0_i32_0 = arith.constant 0 : i32
    %c0_i32_1 = arith.constant 0 : i32
    return %c0_i32, %c0_i32_0 : i32, i32
  }
  func.func @transform_4(%arg0: i32) -> (i32, i32) {
    %c0_i32 = arith.constant 0 : i32
    %c0_i32_0 = arith.constant 0 : i32
    %c0_i32_1 = arith.constant 0 : i32
    return %c0_i32, %c0_i32_0 : i32, i32
  }
  func.func @transform_5(%arg0: i32) -> (i32, i32) {
    %c0_i32 = arith.constant 0 : i32
    %c0_i32_0 = arith.constant 0 : i32
    %c0_i32_1 = arith.constant 0 : i32
    return %c0_i32, %c0_i32_0 : i32, i32
  }
  func.func @transform_6(%arg0: i32) -> (i32, i32) {
    %c0_i32 = arith.constant 0 : i32
    %c0_i32_0 = arith.constant 0 : i32
    %c0_i32_1 = arith.constant 0 : i32
    return %c0_i32, %c0_i32_0 : i32, i32
  }
  func.func @transform_7(%arg0: i32) -> (i32, i32) {
    %c0_i32 = arith.constant 0 : i32
    %c0_i32_0 = arith.constant 0 : i32
    %c0_i32_1 = arith.constant 0 : i32
    return %c0_i32, %c0_i32_0 : i32, i32
  }
  func.func @transform_8(%arg0: i32) -> (i32, i32) {
    %c0_i32 = arith.constant 0 : i32
    %c0_i32_0 = arith.constant 0 : i32
    %c0_i32_1 = arith.constant 0 : i32
    return %c0_i32, %c0_i32_0 : i32, i32
  }
  func.func @transform_9(%arg0: i32) -> (i32, i32) {
    %c0_i32 = arith.constant 0 : i32
    %c0_i32_0 = arith.constant 0 : i32
    %c0_i32_1 = arith.constant 0 : i32
    return %c0_i32, %c0_i32_0 : i32, i32
  }
  func.func @transform_10(%arg0: i32) -> (i32, i32, i32) {
    %c0_i32 = arith.constant 0 : i32
    %c0_i32_0 = arith.constant 0 : i32
    %c0_i32_1 = arith.constant 0 : i32
    return %arg0, %c0_i32, %c0_i32_0 : i32, i32, i32
  }
}

</mosaic_0001>

<bundles_post_ra>
// kernel: tpu_custom_call.1
= control target key start
LH: loop header
LB: loop body
LE: loop exit
PB: predicated region body
PF: predicated region fallthrough
CT: control target
= control target key end

     0   :  { %15 = vsyncpa [#allocation3], 0  ;;  %s2430_s0 = inlined_call_operand.hbm [shape: f32[2,16,32], index: 0, kind: input, shape index: {}]   ;;  %s2431_s1 = inlined_call_operand.hbm [shape: f32[2,16,32], index: 1, kind: input, shape index: {}]   ;;  %s2432_s2 = inlined_call_operand.hbm [shape: bf16[32,32], index: 2, kind: input, shape index: {}]   ;;  %s2433_s3 = inlined_call_operand.vmem [shape: f32[1,32], index: 3, kind: input, shape index: {}]   ;;  %s2434_s4 = inlined_call_operand.hbm [shape: bf16[32,32], index: 4, kind: input, shape index: {}]   ;;  %s2435_s5 = inlined_call_operand.vmem [shape: f32[1,32], index: 5, kind: input, shape index: {}]   ;;  %s2436_s6 = inlined_call_operand.vmem [shape: bf16[32,32], index: 6, kind: input, shape index: {}]   ;;  %s2437_s7 = inlined_call_operand.vmem [shape: f32[1,32], index: 7, kind: input, shape index: {}]   ;;  %s2438_s8 = inlined_call_operand.hbm [shape: bf16[32,32], index: 8, kind: input, shape index: {}]   ;;  %s2439_s9 = inlined_call_operand.vmem [shape: f32[1,32], index: 9, kind: input, shape index: {}]   ;;  %s2440_s10 = inlined_call_operand.hbm [shape: f32[2,16,32], index: 10, kind: output, shape index: {}]  }
   0x1   :  { %16 = vsyncpa [#allocation6], 0 }
   0x2   :  { %17 = vsyncpa [#allocation9], 0 }
   0x3   :  { %18 = vsyncpa [#allocation4], 0  ;;  %s1953_s13 = smov [#allocation5]   ;;  %s1813_s17 = scalar_lea.hbm %s2431_s1, 512 }
   0x4   :  { %s36_s14 = sshll.u32 %s1953_s13, 4  ;;  %p1814_p0 = scmp.ne.s32.totalorder %s2431_s1, %s1813_s17  ;;  %s37_s14 = int_to_ptr.vmem [resolvable:$true] %s36_s14 }
   0x5   :  { %p1817_p1 = scmp.lt.u32.totalorder %s1813_s17, %s2431_s1 }
   0x7   :  { %p1819_p2 = pnand %p1817_p1, %p1814_p0 }
   0x9   :  { %1822 = shalt.err (!%p1819_p2)
}
   0xa   :  { %s1823_s22 = scalar_lea.vmem %s37_s14, 512  ;;  %p1828_p4 = scmp.lt.s32.totalorder %s37_s14, %s37_s14 }
   0xb   :  { %p1824_p3 = scmp.ne.s32.totalorder %s37_s14, %s1823_s22  ;;  %p1829_p5 = scmp.lt.s32.totalorder %s1823_s22, %s1823_s22 }
   0xd   :  { %p1830_p6 = por %p1829_p5, %p1828_p4 }
   0xf   :  { %p1831_p7 = pnand %p1830_p6, %p1824_p3 }
  0x11   :  { %1834 = shalt.err (!%p1831_p7)
}
  0x12   :  { %s1954_s23 = smov 128   ;;  %s1955_s24 = smov 8  }
  0x13   :  { %42 = dma.hbm_to_vmem [thread:$0]  %s2431_s1, 512, %s37_s14, [#allocation6], %s1954_s23, %s1954_s23, %s1955_s24  }
  0x14   :  { %s1956_s27 = smov [#allocation8]   ;;  %s1957_s29 = smov [#allocation2]  }
  0x15   :  { %s62_s28 = sshll.u32 %s1956_s27, 4  ;;  %s24_s30 = sshll.u32 %s1957_s29, 4  ;;  %s63_s28 = int_to_ptr.vmem [resolvable:$true] %s62_s28  ;;  %s25_s30 = int_to_ptr.vmem [resolvable:$true] %s24_s30 }
  0x16   :  { %s1835_s13 = scalar_lea.hbm %s2434_s4, 256 }
  0x17   :  { %p1836_p8 = scmp.ne.s32.totalorder %s2434_s4, %s1835_s13  ;;  %p1839_p9 = scmp.lt.u32.totalorder %s1835_s13, %s2434_s4 }
  0x19   :  { %p1841_p10 = pnand %p1839_p9, %p1836_p8 }
  0x1b   :  { %1844 = shalt.err (!%p1841_p10)
}
  0x1c   :  { %s1845_s1 = scalar_lea.vmem %s63_s28, 256  ;;  %p1850_p12 = scmp.lt.s32.totalorder %s63_s28, %s63_s28 }
  0x1d   :  { %p1846_p11 = scmp.ne.s32.totalorder %s63_s28, %s1845_s1  ;;  %p1851_p13 = scmp.lt.s32.totalorder %s1845_s1, %s1845_s1 }
  0x1f   :  { %p1852_p0 = por %p1851_p13, %p1850_p12 }
  0x21   :  { %p1853_p1 = pnand %p1852_p0, %p1846_p11 }
  0x23   :  { %1856 = shalt.err (!%p1853_p1)
}
  0x24   :  { %s1958_s14 = smov 64   ;;  %s1959_s19 = smov 4  }
  0x25   :  { %68 = dma.hbm_to_vmem [thread:$0]  %s2434_s4, 256, %s63_s28, [#allocation9], %s1958_s14, %s1958_s14, %s1959_s19  }
  0x26   :  { %s1857_s26 = scalar_lea.hbm %s2430_s0, 512 }
  0x27   :  { %p1858_p2 = scmp.ne.s32.totalorder %s2430_s0, %s1857_s26  ;;  %p1861_p3 = scmp.lt.u32.totalorder %s1857_s26, %s2430_s0 }
  0x29   :  { %p1863_p4 = pnand %p1861_p3, %p1858_p2 }
  0x2b   :  { %1866 = shalt.err (!%p1863_p4)
}
  0x2c   :  { %s1867_s13 = scalar_lea.vmem %s25_s30, 512  ;;  %p1872_p6 = scmp.lt.s32.totalorder %s25_s30, %s25_s30 }
  0x2d   :  { %p1868_p5 = scmp.ne.s32.totalorder %s25_s30, %s1867_s13  ;;  %p1873_p7 = scmp.lt.s32.totalorder %s1867_s13, %s1867_s13 }
  0x2f   :  { %p1874_p8 = por %p1873_p7, %p1872_p6 }
  0x31   :  { %p1875_p9 = pnand %p1874_p8, %p1868_p5 }
  0x33   :  { %1878 = shalt.err (!%p1875_p9)
}
  0x34   :  { %30 = dma.hbm_to_vmem [thread:$0]  %s2430_s0, 512, %s25_s30, [#allocation3], %s1954_s23, %s1954_s23, %s1955_s24  }
  0x35   :  { %s1960_s15 = smov [#allocation7]   ;;  %s1961_s17 = smov [#allocation10]  }
  0x36   :  { %s48_s16 = sshll.u32 %s1960_s15, 4  ;;  %s80_s18 = sshll.u32 %s1961_s17, 4  ;;  %s49_s16 = int_to_ptr.vmem [resolvable:$true] %s48_s16  ;;  %s81_s18 = int_to_ptr.vmem [resolvable:$true] %s80_s18 }
  0x37   :  { %s1879_s21 = scalar_lea.hbm %s2432_s2, 256 }
  0x38   :  { %p1880_p10 = scmp.ne.s32.totalorder %s2432_s2, %s1879_s21  ;;  %p1883_p11 = scmp.lt.u32.totalorder %s1879_s21, %s2432_s2 }
  0x3a   :  { %p1885_p12 = pnand %p1883_p11, %p1880_p10 }
  0x3c   :  { %1888 = shalt.err (!%p1885_p12)
}
  0x3d   :  { %s1889_s0 = scalar_lea.vmem %s49_s16, 256  ;;  %p1894_p0 = scmp.lt.s32.totalorder %s49_s16, %s49_s16 }
  0x3e   :  { %p1890_p13 = scmp.ne.s32.totalorder %s49_s16, %s1889_s0  ;;  %p1895_p1 = scmp.lt.s32.totalorder %s1889_s0, %s1889_s0 }
  0x40   :  { %p1896_p2 = por %p1895_p1, %p1894_p0 }
  0x42   :  { %p1897_p3 = pnand %p1896_p2, %p1890_p13 }
  0x44   :  { %1900 = shalt.err (!%p1897_p3)
}
  0x45   :  { %54 = dma.hbm_to_vmem [thread:$0]  %s2432_s2, 256, %s49_s16, [#allocation6], %s1958_s14, %s1958_s14, %s1959_s19  }
  0x46   :  { %s1901_s13 = scalar_lea.hbm %s2438_s8, 256 }
  0x47   :  { %p1902_p4 = scmp.ne.s32.totalorder %s2438_s8, %s1901_s13  ;;  %p1905_p5 = scmp.lt.u32.totalorder %s1901_s13, %s2438_s8 }
  0x49   :  { %p1907_p6 = pnand %p1905_p5, %p1902_p4 }
  0x4b   :  { %1910 = shalt.err (!%p1907_p6)
}
  0x4c   :  { %s1911_s1 = scalar_lea.vmem %s81_s18, 256  ;;  %p1916_p8 = scmp.lt.s32.totalorder %s81_s18, %s81_s18 }
  0x4d   :  { %p1912_p7 = scmp.ne.s32.totalorder %s81_s18, %s1911_s1  ;;  %p1917_p9 = scmp.lt.s32.totalorder %s1911_s1, %s1911_s1 }
  0x4f   :  { %p1918_p10 = por %p1917_p9, %p1916_p8 }
  0x51   :  { %p1919_p11 = pnand %p1918_p10, %p1912_p7 }
  0x53   :  { %1922 = shalt.err (!%p1919_p11)
}
  0x54   :  { %86 = dma.hbm_to_vmem [thread:$0]  %s2438_s8, 256, %s81_s18, [#allocation9], %s1958_s14, %s1958_s14, %s1959_s19  }
  0x55   :  { %1945 = dma.done.wait [#allocation3], 512  }
  0x56   :  { %1946 = vsyncadd [#allocation3], 4294966784 }
  0x57   :  { %1947 = dma.done.wait [#allocation6], 768  }
  0x58   :  { %1948 = vsyncadd [#allocation6], 4294966528 }
  0x59   :  { %1949 = dma.done.wait [#allocation9], 512  }
  0x5a   :  { %1950 = vsyncadd [#allocation9], 4294966784  ;;  %v1741_v0 = vld [vmem:[#allocation7] sm:$0xff]   ;;  %v1742_v1 = vld [vmem:[#allocation8] sm:$0xff]   ;;  %vm140_vm0 = vcmask 261120   ;;  %v1962_v16 = vmov 0.0  }
  0x5b   :  { %1566 = vmatprep.subr.bf16.mxu0 %v1741_v0  ;;  %v1743_v2 = vld [vmem:[#allocation7 + $0x8] sm:$0xff]   ;;  %1574 = vmatprep.subr.bf16.mxu1 %v1742_v1  ;;  %v1744_v3 = vld [vmem:[#allocation8 + $0x8] sm:$0xff]   ;;  %v105_v4 = vld [vmem:[#allocation2] sm:$0xff]  ;;  %vm1963_vm1 = vmmov 0   ;;  %vm356_vm2 = vcmask 64512   ;;  %s1966_s25 = smov 104  }
  0x5c   :  { %1567 = vmatpush3.bf16.msra.mxu0 %v1741_v0  ;;  %1575 = vmatpush3.bf16.msra.mxu1 %v1742_v1  ;;  %v106_v5 = vld [vmem:[#allocation2 + $0x8] sm:$0xff]  ;;  %v109_v6 = vld [vmem:[#allocation5] sm:$0xff]  ;;  %v107_v9 = vld [vmem:[#allocation2 + $0x10] sm:$0xff]  ;;  %vm761_vm3 = vcmask 130048   ;;  %s1968_s0 = smov 24   ;;  %vm1156_vm4 = vcmask 195584  }
  0x5d   :  { %1568 = vmatprep.subr.bf16.mxu0 %v1743_v2  ;;  %1576 = vmatprep.subr.bf16.mxu1 %v1744_v3  ;;  %v113_v7 = vpack.c.bf16 %v106_v5, %v105_v4  ;;  %v110_v8 = vld [vmem:[#allocation5 + $0x8] sm:$0xff]  ;;  %v108_v10 = vld [vmem:[#allocation2 + $0x18] sm:$0xff]  ;;  %v111_v13 = vld [vmem:[#allocation5 + $0x10] sm:$0xff]  ;;  %s1969_s11 = smov [#allocation11]  }
  0x5e   :  { %v115_v11 = vpack.c.bf16 %v110_v8, %v109_v6  ;;  %v114_v12 = vpack.c.bf16 %v108_v10, %v107_v9  ;;  %v112_v14 = vld [vmem:[#allocation5 + $0x18] sm:$0xff]  ;;  %v1745_v17 = vld [vmem:[%s2436_s6] sm:$0xff]   ;;  %v1746_v18 = vld [vmem:[%s2436_s6 + $0x8] sm:$0xff]   ;;  %s1468_s12 = sshll.u32 %s1969_s11, 4  ;;  %s1469_s12 = int_to_ptr.vmem [resolvable:$true] %s1468_s12 }
  0x5f   :  { %1570 = vmatprep.mubr.msk.bf16.mxu0 %vm140_vm0, %v113_v7  ;;  %v116_v15 = vpack.c.bf16 %v112_v14, %v111_v13  ;;  %v1482_v19 = vld [vmem:[%s2433_s3] ss:$0 sm:$0xff]  ;;  %s1964_s3 = smov 120   ;;  %p1928_p13 = scmp.lt.s32.totalorder %s1469_s12, %s1469_s12 }
  0x60   :  { %1569 = vmatpush3.bf16.msra.mxu0 %v1743_v2  ;;  %1577 = vmatpush3.bf16.msra.mxu1 %v1744_v3  ;;  %v1487_v23 = vld [vmem:[%s2435_s5] ss:$0 sm:$0xff]  ;;  %s1965_s5 = smov 112  }
  0x61   :  { %1578 = vmatprep.mubr.msk.bf16.mxu1 %vm140_vm0, %v115_v11  ;;  %1590 = vmatprep.subr.bf16.mxu1 %v1962_v16  ;;  %v1492_v46 = vld [vmem:[%s2437_s7] ss:$0 sm:$0xff]  ;;  %s1967_s7 = smov 16  }
  0x62   :  { %1582 = vmatprep.subr.bf16.mxu0 %v1745_v17 }
  0x63   :  { %1571 = vmatmul.mubr.msk.bf16.vlgmr.msra.gmra.mrb[0].mxu0 %vm140_vm0, %v114_v12  ;;  %1579 = vmatmul.mubr.msk.bf16.vlgmr.msra.gmra.mrb[0].mxu1 %vm140_vm0, %v116_v15 }
  0x64   :  { %1586 = vmatprep.mubr.msk.bf16.mxu0 %vm140_vm0, %v115_v11  ;;  %1592 = vmatprep.mubr.msk.bf16.mxu1 %vm1963_vm1, %v1962_v16 }
  0x65   :  { %1583 = vmatpush3.bf16.msra.mxu0 %v1745_v17 }
  0x66   :  { %1584 = vmatprep.subr.bf16.mxu0 %v1746_v18 }
  0x69   :  { %1585 = vmatpush3.bf16.msra.mxu0 %v1746_v18 }
  0x6a   :  { %1596 = vmatprep.subr.bf16.mxu0 %v1962_v16 }
  0x6c   :  { %1587 = vmatmul.mubr.msk.bf16.vlgmr.msra.gmra.mrb[4].mxu0 %vm140_vm0, %v116_v15 }
  0x6d   :  { %1598 = vmatprep.mubr.msk.bf16.mxu0 %vm1963_vm1, %v1962_v16 }
 0x136   :  { %v1572_v20 = vpop.f32.mrb[0].mxu0  ;;  %v1580_v22 = vpop.f32.mrb[0].mxu1 }
 0x137   :  { %v190_v21 = vadd.f32 %v1572_v20, %v1482_v19  ;;  %v181_v24 = vpop.f32.mrb[1].mxu0  ;;  %v259_v26 = vpop.f32.mrb[1].mxu1  ;;  %v268_v32 = vadd.f32 %v1580_v22, %v1487_v23 }
 0x138   :  { %v182_v25 = vadd.f32 %v1482_v19, %v181_v24  ;;  %v1573_v27 = vpop.f32.mrb[2].mxu0  ;;  %v1581_v30 = vpop.f32.mrb[2].mxu1  ;;  %v260_v37 = vadd.f32 %v1487_v23, %v259_v26 }
 0x139   :  { %v348_v28 = vmul.f32 0.35355338, %v190_v21  ;;  %v193_v29 = vadd.f32 %v1573_v27, %v1482_v19  ;;  %v184_v31 = vpop.f32.mrb[3].mxu0  ;;  %v271_v34 = vadd.f32 %v1581_v30, %v1487_v23  ;;  %v262_v36 = vpop.f32.mrb[3].mxu1 }
 0x13a   :  { %v346_v33 = vmul.f32 0.35355338, %v182_v25  ;;  %v185_v35 = vadd.f32 %v1482_v19, %v184_v31  ;;  %v263_v39 = vadd.f32 %v1487_v23, %v262_v36 }
 0x13b   :  { %v349_v38 = vmul.f32 0.35355338, %v193_v29  ;;  %v353_v40 = vpack.c.bf16 %v271_v34, %v268_v32 }
 0x13c   :  { %v347_v41 = vmul.f32 0.35355338, %v185_v35  ;;  %v352_v43 = vpack.c.bf16 %v263_v39, %v260_v37 }
 0x13d   :  { %v2124_v42 = vpack.c.bf16 %v349_v38, %v348_v28  ;;  %v563_v2 = vsel %vm356_vm2, %v353_v40, 0 }
 0x13e   :  { %v350_v44 = vpack.c.bf16 %v347_v41, %v346_v33  ;;  %408 = vrot.lane.b32.xlu0 %v352_v43, %s1964_s3  ;;  %v361_v45 = vsel %vm356_vm2, %v352_v43, 0 }
 0x13f   :  { %1591 = vmatpush3.bf16.xpose.msra.mxu1 %v361_v45  ;;  %v1588_v48 = vpop.f32.mrb[4].mxu0 }
 0x140   :  { %405 = vrot.lane.b32.xlu1 %v350_v44, %s1964_s3  ;;  %1602 = vmatprep.subr.bf16.mxu1 %v1962_v16  ;;  %v340_v51 = vadd.f32 %v1588_v48, %v1492_v46  ;;  %v331_v52 = vpop.f32.mrb[5].mxu0 }
 0x141   :  { %v332_v53 = vadd.f32 %v1492_v46, %v331_v52  ;;  %v1589_v54 = vpop.f32.mrb[6].mxu0 }
 0x142   :  { %459 = vrot.lane.b32.xlu0 %v352_v43, %s1965_s5  ;;  %v343_v55 = vadd.f32 %v1589_v54, %v1492_v46  ;;  %v334_v56 = vpop.f32.mrb[7].mxu0 }
 0x143   :  { %v335_v58 = vadd.f32 %v1492_v46, %v334_v56 }
 0x144   :  { %510 = vrot.lane.b32.xlu1 %v352_v43, %s1966_s25  ;;  %v2152_v61 = vpack.c.bf16 %v343_v55, %v340_v51 }
 0x145   :  { %v2154_v62 = vpack.c.bf16 %v335_v58, %v332_v53 }
 0x146   :  { %457 = vrot.lane.b32.xlu0 %v350_v44, %s1965_s5  ;;  %1593 = vmatmul.mubr.msk.bf16.vlgmr.msra.gmra.mrb[4].mxu1 %vm356_vm2, %v350_v44 }
 0x147   :  { %1604 = vmatprep.mubr.msk.bf16.mxu1 %vm1963_vm1, %v1962_v16 }
 0x148   :  { %508 = vrot.lane.b32.xlu1 %v350_v44, %s1966_s25 }
 0x14a   :  { %610 = vrot.lane.b32.xlu0 %v353_v40, %s1964_s3 }
 0x14c   :  { %661 = vrot.lane.b32.xlu1 %v353_v40, %s1965_s5 }
 0x14e   :  { %607 = vrot.lane.b32.xlu0 %v2124_v42, %s1964_s3 }
 0x150   :  { %712 = vrot.lane.b32.xlu1 %v353_v40, %s1966_s25 }
 0x152   :  { %659 = vrot.lane.b32.xlu0 %v2124_v42, %s1965_s5 }
 0x154   :  { %710 = vrot.lane.b32.xlu1 %v2124_v42, %s1966_s25 }
 0x1b0   :  { %v409_v47 = vpop.permute.xlu0 %408 }
 0x1b1   :  { %v414_v49 = vsel %vm356_vm2, %v409_v47, 0 }
 0x1b2   :  { %v406_v50 = vpop.permute.xlu1 %405  ;;  %1597 = vmatpush3.bf16.xpose.msra.mxu0 %v414_v49 }
 0x1b3   :  { %1608 = vmatprep.subr.bf16.mxu0 %v1962_v16 }
 0x1b4   :  { %v460_v57 = vpop.permute.xlu0 %459 }
 0x1b5   :  { %v465_v59 = vsel %vm356_vm2, %v460_v57, 0 }
 0x1b6   :  { %v511_v60 = vpop.permute.xlu1 %510  ;;  %1603 = vmatpush3.bf16.xpose.msra.mxu1 %v465_v59 }
 0x1b7   :  { %1614 = vmatprep.subr.bf16.mxu1 %v1962_v16  ;;  %v516_v0 = vsel %vm356_vm2, %v511_v60, 0 }
 0x1b8   :  { %v458_v63 = vpop.permute.xlu0 %457 }
 0x1b9   :  { %1599 = vmatmul.mubr.msk.bf16.vlgmr.msra.gmra.mrb[8].mxu0 %vm356_vm2, %v406_v50 }
 0x1ba   :  { %1609 = vmatpush3.bf16.xpose.msra.mxu0 %v516_v0  ;;  %v509_v1 = vpop.permute.xlu1 %508  ;;  %1610 = vmatprep.mubr.msk.bf16.mxu0 %vm1963_vm1, %v1962_v16 }
 0x1bb   :  { %1620 = vmatprep.subr.bf16.mxu0 %v1962_v16 }
 0x1bc   :  { %v611_v3 = vpop.permute.xlu0 %610 }
 0x1bd   :  { %1605 = vmatmul.mubr.msk.bf16.vlgmr.msra.gmra.mrb[8].mxu1 %vm356_vm2, %v458_v63  ;;  %v616_v5 = vsel %vm356_vm2, %v611_v3, 0 }
 0x1be   :  { %1615 = vmatpush3.bf16.xpose.msra.mxu1 %v563_v2  ;;  %1616 = vmatprep.mubr.msk.bf16.mxu1 %vm1963_vm1, %v1962_v16  ;;  %v662_v4 = vpop.permute.xlu1 %661 }
 0x1bf   :  { %1626 = vmatprep.subr.bf16.mxu1 %v1962_v16  ;;  %v667_v6 = vsel %vm356_vm2, %v662_v4, 0 }
 0x1c0   :  { %v608_v7 = vpop.permute.xlu0 %607 }
 0x1c1   :  { %1611 = vmatmul.mubr.msk.bf16.vlgmr.msra.gmra.mrb[12].mxu0 %vm356_vm2, %v509_v1 }
 0x1c2   :  { %1621 = vmatpush3.bf16.xpose.msra.mxu0 %v616_v5  ;;  %1622 = vmatprep.mubr.msk.bf16.mxu0 %vm1963_vm1, %v1962_v16  ;;  %v713_v8 = vpop.permute.xlu1 %712 }
 0x1c3   :  { %1632 = vmatprep.subr.bf16.mxu0 %v1962_v16  ;;  %v718_v9 = vsel %vm356_vm2, %v713_v8, 0 }
 0x1c4   :  { %v660_v10 = vpop.permute.xlu0 %659 }
 0x1c5   :  { %1617 = vmatmul.mubr.msk.bf16.vlgmr.msra.gmra.mrb[12].mxu1 %vm356_vm2, %v2124_v42 }
 0x1c6   :  { %1627 = vmatpush3.bf16.xpose.msra.mxu1 %v667_v6  ;;  %1628 = vmatprep.mubr.msk.bf16.mxu1 %vm1963_vm1, %v1962_v16  ;;  %v711_v11 = vpop.permute.xlu1 %710 }
 0x1c7   :  { %1638 = vmatprep.subr.bf16.mxu1 %v1962_v16 }
 0x1c9   :  { %1623 = vmatmul.mubr.msk.bf16.vlgmr.msra.gmra.mrb[16].mxu0 %vm356_vm2, %v608_v7 }
 0x1ca   :  { %1633 = vmatpush3.bf16.xpose.msra.mxu0 %v718_v9  ;;  %1634 = vmatprep.mubr.msk.bf16.mxu0 %vm1963_vm1, %v1962_v16 }
 0x1cb   :  { %1644 = vmatprep.subr.bf16.mxu0 %v1962_v16 }
 0x1cd   :  { %1629 = vmatmul.mubr.msk.bf16.vlgmr.msra.gmra.mrb[16].mxu1 %vm356_vm2, %v660_v10 }
 0x1ce   :  { %1639 = vmatpush3.bf16.msra.mxu1 %v2154_v62  ;;  %1640 = vmatprep.mubr.msk.bf16.mxu1 %vm1963_vm1, %v1962_v16 }
 0x1cf   :  { %1650 = vmatprep.subr.bf16.mxu1 %v1962_v16 }
 0x1d1   :  { %1635 = vmatmul.mubr.msk.bf16.vlgmr.msra.gmra.mrb[20].mxu0 %vm356_vm2, %v711_v11 }
 0x1d2   :  { %1646 = vmatprep.mubr.msk.bf16.mxu0 %vm1963_vm1, %v1962_v16 }
 0x219   :  { %v2191_v12 = vpop.f32.mrb[4].mxu1 }
 0x21a   :  { %v1594_v13 = vpop.f32.mrb[5].mxu1  ;;  %v762_v14 = vsel %vm761_vm3, %v2191_v12, -inf }
 0x21b   :  { %763 = vmax.xlane.f32.xlu0 %v762_v14  ;;  %v2195_v15 = vpop.f32.mrb[6].mxu1 }
 0x21c   :  { %v1595_v17 = vpop.f32.mrb[7].mxu1  ;;  %v765_v18 = vsel %vm761_vm3, %v2195_v15, -inf }
 0x21d   :  { %766 = vmax.xlane.f32.xlu1 %v765_v18 }
 0x28c   :  { %v2199_v19 = vpop.f32.mrb[8].mxu0 }
 0x28d   :  { %v1600_v20 = vpop.f32.mrb[9].mxu0  ;;  %v768_v21 = vsel %vm761_vm3, %v2199_v19, -inf }
 0x28e   :  { %v2203_v22 = vpop.f32.mrb[10].mxu0  ;;  %769 = vmax.xlane.f32.xlu0 %v768_v21 }
 0x28f   :  { %v1601_v23 = vpop.f32.mrb[11].mxu0  ;;  %v771_v26 = vsel %vm761_vm3, %v2203_v22, -inf }
 0x290   :  { %v2205_v24 = vpop.f32.mrb[8].mxu1 }
 0x291   :  { %v1606_v25 = vpop.f32.mrb[9].mxu1  ;;  %v774_v27 = vsel %vm761_vm3, %v2205_v24, -inf }
 0x292   :  { %772 = vmax.xlane.f32.xlu0 %v771_v26  ;;  %775 = vmax.xlane.f32.xlu1 %v774_v27  ;;  %v2211_v28 = vpop.f32.mrb[10].mxu1 }
 0x293   :  { %v1607_v29 = vpop.f32.mrb[11].mxu1  ;;  %v777_v33 = vsel %vm761_vm3, %v2211_v28, -inf }
 0x294   :  { %v2213_v30 = vpop.f32.mrb[12].mxu0 }
 0x295   :  { %v1612_v31 = vpop.f32.mrb[13].mxu0  ;;  %v780_v32 = vsel %vm761_vm3, %v2213_v30, -inf }
 0x296   :  { %v2219_v34 = vpop.f32.mrb[14].mxu0  ;;  %781 = vmax.xlane.f32.xlu1 %v780_v32  ;;  %778 = vmax.xlane.f32.xlu0 %v777_v33 }
 0x297   :  { %v1613_v35 = vpop.f32.mrb[15].mxu0  ;;  %v783_v38 = vsel %vm761_vm3, %v2219_v34, -inf }
 0x298   :  { %v2221_v36 = vpop.f32.mrb[12].mxu1 }
 0x299   :  { %v1618_v37 = vpop.f32.mrb[13].mxu1  ;;  %v786_v39 = vsel %vm761_vm3, %v2221_v36, -inf }
 0x29a   :  { %784 = vmax.xlane.f32.xlu0 %v783_v38  ;;  %787 = vmax.xlane.f32.xlu1 %v786_v39  ;;  %v2227_v40 = vpop.f32.mrb[14].mxu1 }
 0x29b   :  { %v1619_v41 = vpop.f32.mrb[15].mxu1  ;;  %v789_v45 = vsel %vm761_vm3, %v2227_v40, -inf }
 0x29c   :  { %v2229_v42 = vpop.f32.mrb[16].mxu0 }
 0x29d   :  { %v1624_v43 = vpop.f32.mrb[17].mxu0  ;;  %v792_v44 = vsel %vm761_vm3, %v2229_v42, -inf }
 0x29e   :  { %v2235_v46 = vpop.f32.mrb[18].mxu0  ;;  %793 = vmax.xlane.f32.xlu1 %v792_v44  ;;  %790 = vmax.xlane.f32.xlu0 %v789_v45 }
 0x29f   :  { %v1625_v47 = vpop.f32.mrb[19].mxu0  ;;  %v795_v50 = vsel %vm761_vm3, %v2235_v46, -inf }
 0x2a0   :  { %v2237_v48 = vpop.f32.mrb[16].mxu1 }
 0x2a1   :  { %v1630_v49 = vpop.f32.mrb[17].mxu1  ;;  %v798_v51 = vsel %vm761_vm3, %v2237_v48, -inf }
 0x2a2   :  { %796 = vmax.xlane.f32.xlu0 %v795_v50  ;;  %799 = vmax.xlane.f32.xlu1 %v798_v51  ;;  %v2243_v52 = vpop.f32.mrb[18].mxu1 }
 0x2a3   :  { %v1631_v53 = vpop.f32.mrb[19].mxu1  ;;  %v801_v57 = vsel %vm761_vm3, %v2243_v52, -inf }
 0x2a4   :  { %v2245_v54 = vpop.f32.mrb[20].mxu0 }
 0x2a5   :  { %v1636_v55 = vpop.f32.mrb[21].mxu0  ;;  %v804_v56 = vsel %vm761_vm3, %v2245_v54, -inf }
 0x2a6   :  { %v2251_v58 = vpop.f32.mrb[22].mxu0  ;;  %805 = vmax.xlane.f32.xlu1 %v804_v56  ;;  %802 = vmax.xlane.f32.xlu0 %v801_v57 }
 0x2a7   :  { %v1637_v59 = vpop.f32.mrb[23].mxu0  ;;  %v807_v60 = vsel %vm761_vm3, %v2251_v58, -inf }
 0x2a8   :  { %v764_v1 = vpop.xlane.xlu0 %763 }
 0x2a9   :  { %v810_v2 = vsub.f32 %v2191_v12, %v764_v1 }
 0x2aa   :  { %808 = vmax.xlane.f32.xlu0 %v807_v60  ;;  %v767_v63 = vpop.xlane.xlu1 %766 }
 0x2ab   :  { %v811_v0 = vsub.f32 %v2195_v15, %v767_v63  ;;  %v826_v4 = vmul.f32 1.442695, %v810_v2 }
 0x2ad   :  { %v828_v3 = vmul.f32 1.442695, %v811_v0 }
 0x2af   :  { %1749 = vpow2.f32 %v828_v3 }
 0x2b0   :  { %1751 = vpow2.f32 %v826_v4 }
 0x2b7   :  { %985 = vrot.lane.b32.xlu1 %v2154_v62, %s1964_s3 }
 0x2b9   :  { %v2265_v5 = vpop.eup %1749 }
 0x2ba   :  { %v861_v6 = vsel %vm761_vm3, %v2265_v5, 0.0  ;;  %v2269_v7 = vpop.eup %1751 }
 0x2bb   :  { %1081 = vrot.lane.b32.xlu1 %v2154_v62, %s1966_s25 }
 0x2bf   :  { %1206 = vrot.lane.b32.xlu1 %v2152_v61, %s1964_s3 }
 0x2c0   :  { %1033 = vrot.lane.b32.xlu0 %v2154_v62, %s1965_s5  ;;  %v858_v62 = vsel %vm761_vm3, %v2269_v7, 0.0 }
 0x2df   :  { %862 = vadd.xlane.f32.xlu0 %v861_v6 }
 0x2e3   :  { %859 = vadd.xlane.f32.xlu1 %v858_v62 }
 0x31b   :  { %v770_v8 = vpop.xlane.xlu0 %769 }
 0x31c   :  { %v812_v9 = vsub.f32 %v2199_v19, %v770_v8 }
 0x31e   :  { %v830_v10 = vmul.f32 1.442695, %v812_v9 }
 0x31f   :  { %v773_v11 = vpop.xlane.xlu0 %772  ;;  %v776_v12 = vpop.xlane.xlu1 %775 }
 0x320   :  { %1753 = vpow2.f32 %v830_v10  ;;  %v813_v13 = vsub.f32 %v2203_v22, %v773_v11  ;;  %v814_v14 = vsub.f32 %v2205_v24, %v776_v12 }
 0x322   :  { %v832_v15 = vmul.f32 1.442695, %v813_v13  ;;  %v834_v17 = vmul.f32 1.442695, %v814_v14 }
 0x323   :  { %v782_v18 = vpop.xlane.xlu1 %781  ;;  %v779_v20 = vpop.xlane.xlu0 %778 }
 0x324   :  { %1755 = vpow2.f32 %v832_v15  ;;  %v816_v21 = vsub.f32 %v2213_v30, %v782_v18  ;;  %v815_v23 = vsub.f32 %v2211_v28, %v779_v20 }
 0x325   :  { %1757 = vpow2.f32 %v834_v17 }
 0x326   :  { %v838_v25 = vmul.f32 1.442695, %v816_v21  ;;  %v836_v19 = vmul.f32 1.442695, %v815_v23 }
 0x327   :  { %v785_v26 = vpop.xlane.xlu0 %784  ;;  %v788_v27 = vpop.xlane.xlu1 %787 }
 0x328   :  { %1759 = vpow2.f32 %v838_v25  ;;  %v817_v29 = vsub.f32 %v2219_v34, %v785_v26  ;;  %v818_v22 = vsub.f32 %v2221_v36, %v788_v27 }
 0x329   :  { %1761 = vpow2.f32 %v836_v19 }
 0x32a   :  { %v2280_v24 = vpop.eup %1753  ;;  %v840_v31 = vmul.f32 1.442695, %v817_v29  ;;  %v842_v32 = vmul.f32 1.442695, %v818_v22 }
 0x32b   :  { %v794_v33 = vpop.xlane.xlu1 %793  ;;  %v791_v35 = vpop.xlane.xlu0 %790  ;;  %v864_v28 = vsel %vm761_vm3, %v2280_v24, 0.0 }
 0x32c   :  { %1763 = vpow2.f32 %v840_v31  ;;  %v820_v30 = vsub.f32 %v2229_v42, %v794_v33  ;;  %v819_v37 = vsub.f32 %v2227_v40, %v791_v35  ;;  %865 = vadd.xlane.f32.xlu1 %v864_v28 }
 0x32d   :  { %1765 = vpow2.f32 %v842_v32 }
 0x32e   :  { %v2286_v34 = vpop.eup %1755  ;;  %v846_v36 = vmul.f32 1.442695, %v820_v30  ;;  %v844_v38 = vmul.f32 1.442695, %v819_v37 }
 0x32f   :  { %v2288_v39 = vpop.eup %1757  ;;  %v797_v41 = vpop.xlane.xlu0 %796  ;;  %v867_v44 = vsel %vm761_vm3, %v2286_v34, 0.0 }
 0x330   :  { %v800_v43 = vpop.xlane.xlu1 %799  ;;  %1767 = vpow2.f32 %v846_v36  ;;  %v821_v45 = vsub.f32 %v2235_v46, %v797_v41  ;;  %v870_v40 = vsel %vm761_vm3, %v2288_v39, 0.0  ;;  %868 = vadd.xlane.f32.xlu0 %v867_v44 }
 0x331   :  { %v822_v42 = vsub.f32 %v2237_v48, %v800_v43  ;;  %1769 = vpow2.f32 %v844_v38  ;;  %871 = vadd.xlane.f32.xlu1 %v870_v40 }
 0x332   :  { %v2296_v47 = vpop.eup %1759  ;;  %v848_v49 = vmul.f32 1.442695, %v821_v45 }
 0x333   :  { %v850_v50 = vmul.f32 1.442695, %v822_v42  ;;  %v2298_v51 = vpop.eup %1761  ;;  %v803_v55 = vpop.xlane.xlu0 %802  ;;  %v876_v56 = vsel %vm761_vm3, %v2296_v47, 0.0 }
 0x334   :  { %v806_v53 = vpop.xlane.xlu1 %805  ;;  %1771 = vpow2.f32 %v848_v49  ;;  %v823_v48 = vsub.f32 %v2243_v52, %v803_v55  ;;  %v873_v57 = vsel %vm761_vm3, %v2298_v51, 0.0 }
 0x335   :  { %v824_v46 = vsub.f32 %v2245_v54, %v806_v53  ;;  %1773 = vpow2.f32 %v850_v50  ;;  %877 = vadd.xlane.f32.xlu1 %v876_v56  ;;  %874 = vadd.xlane.f32.xlu0 %v873_v57 }
 0x336   :  { %v2306_v59 = vpop.eup %1763  ;;  %v852_v63 = vmul.f32 1.442695, %v823_v48 }
 0x337   :  { %v854_v60 = vmul.f32 1.442695, %v824_v46  ;;  %v2308_v0 = vpop.eup %1765  ;;  %v809_v2 = vpop.xlane.xlu0 %808  ;;  %v879_v3 = vsel %vm761_vm3, %v2306_v59, 0.0 }
 0x338   :  { %v986_v1 = vpop.permute.xlu1 %985  ;;  %v825_v52 = vsub.f32 %v2251_v58, %v809_v2  ;;  %v882_v54 = vsel %vm761_vm3, %v2308_v0, 0.0 }
 0x339   :  { %1775 = vpow2.f32 %v854_v60  ;;  %1645 = vmatpush3.bf16.msra.mxu0 %v986_v1  ;;  %883 = vadd.xlane.f32.xlu1 %v882_v54 }
 0x33a   :  { %1777 = vpow2.f32 %v852_v63  ;;  %880 = vadd.xlane.f32.xlu0 %v879_v3  ;;  %v2315_v4 = vpop.eup %1767  ;;  %v856_v6 = vmul.f32 1.442695, %v825_v52  ;;  %1656 = vmatprep.subr.bf16.mxu0 %v1962_v16 }
 0x33b   :  { %v2318_v62 = vpop.eup %1769  ;;  %v888_v8 = vsel %vm761_vm3, %v2315_v4, 0.0  ;;  %v1034_v23 = vpop.permute.xlu0 %1033 }
 0x33c   :  { %1779 = vpow2.f32 %v856_v6  ;;  %v885_v58 = vsel %vm761_vm3, %v2318_v62, 0.0  ;;  %v1082_v21 = vpop.permute.xlu1 %1081 }
 0x33d   :  { %889 = vadd.xlane.f32.xlu1 %v888_v8 }
 0x33e   :  { %886 = vadd.xlane.f32.xlu0 %v885_v58  ;;  %v2324_v9 = vpop.eup %1771 }
 0x33f   :  { %v2326_v10 = vpop.eup %1773  ;;  %v891_v11 = vsel %vm761_vm3, %v2324_v9, 0.0 }
 0x340   :  { %v894_v12 = vsel %vm761_vm3, %v2326_v10, 0.0  ;;  %v2348_v25 = vpop.permute.xlu1 %1206 }
 0x341   :  { %895 = vadd.xlane.f32.xlu1 %v894_v12 }
 0x342   :  { %892 = vadd.xlane.f32.xlu0 %v891_v11 }
 0x343   :  { %v2332_v13 = vpop.eup %1775 }
 0x344   :  { %v2334_v14 = vpop.eup %1777  ;;  %v900_v15 = vsel %vm761_vm3, %v2332_v13, 0.0 }
 0x345   :  { %v897_v17 = vsel %vm761_vm3, %v2334_v14, 0.0  ;;  %901 = vadd.xlane.f32.xlu1 %v900_v15 }
 0x346   :  { %898 = vadd.xlane.f32.xlu0 %v897_v17  ;;  %v2340_v18 = vpop.eup %1779 }
 0x347   :  { %v903_v20 = vsel %vm761_vm3, %v2340_v18, 0.0 }
 0x34a   :  { %904 = vadd.xlane.f32.xlu0 %v903_v20 }
 0x356   :  { %1302 = vrot.lane.b32.xlu1 %v2152_v61, %s1966_s25 }
 0x360   :  { %1254 = vrot.lane.b32.xlu0 %v2152_v61, %s1965_s5 }
 0x36c   :  { %v863_v19 = vpop.xlane.xlu0 %862 }
 0x36d   :  { %1781 = vrcp.f32 %v863_v19 }
 0x370   :  { %v860_v26 = vpop.xlane.xlu1 %859 }
 0x371   :  { %1783 = vrcp.f32 %v860_v26 }
 0x377   :  { %v1782_v27 = vpop.eup %1781 }
 0x378   :  { %v923_v22 = vmul.f32 %v1782_v27, %v2265_v5 }
 0x37b   :  { %v1784_v29 = vpop.eup %1783 }
 0x37c   :  { %v922_v31 = vmul.f32 %v1784_v29, %v2269_v7 }
 0x37e   :  { %v938_v32 = vpack.c.bf16 %v923_v22, %v922_v31 }
 0x380   :  { %1641 = vmatmul.mubr.msk.bf16.vlgmr.msra.gmra.mrb[20].mxu1 %vm761_vm3, %v938_v32 }
 0x381   :  { %1651 = vmatpush3.bf16.msra.mxu1 %v1034_v23  ;;  %1652 = vmatprep.mubr.msk.bf16.mxu1 %vm1963_vm1, %v1962_v16 }
 0x382   :  { %1662 = vmatprep.subr.bf16.mxu1 %v1962_v16 }
 0x3b9   :  { %v866_v33 = vpop.xlane.xlu1 %865 }
 0x3ba   :  { %1785 = vrcp.f32 %v866_v33 }
 0x3bd   :  { %v869_v35 = vpop.xlane.xlu0 %868 }
 0x3be   :  { %v872_v28 = vpop.xlane.xlu1 %871  ;;  %1787 = vrcp.f32 %v869_v35 }
 0x3bf   :  { %1789 = vrcp.f32 %v872_v28 }
 0x3c2   :  { %v878_v30 = vpop.xlane.xlu1 %877  ;;  %v875_v37 = vpop.xlane.xlu0 %874 }
 0x3c3   :  { %1791 = vrcp.f32 %v875_v37 }
 0x3c4   :  { %v1786_v5 = vpop.eup %1785  ;;  %1793 = vrcp.f32 %v878_v30 }
 0x3c5   :  { %v924_v41 = vmul.f32 %v1786_v5, %v2280_v24 }
 0x3c6   :  { %v884_v7 = vpop.xlane.xlu1 %883 }
 0x3c7   :  { %v881_v36 = vpop.xlane.xlu0 %880 }
 0x3c8   :  { %v1788_v38 = vpop.eup %1787  ;;  %1795 = vrcp.f32 %v881_v36  ;;  %v1747_v36 = vld [vmem:[#allocation10] sm:$0xff]  }
 0x3c9   :  { %v925_v43 = vmul.f32 %v1788_v38, %v2286_v34  ;;  %1797 = vrcp.f32 %v884_v7  ;;  %v1790_v40 = vpop.eup %1789 }
 0x3ca   :  { %v890_v44 = vpop.xlane.xlu1 %889  ;;  %v926_v24 = vmul.f32 %v1790_v40, %v2288_v39 }
 0x3cb   :  { %v887_v45 = vpop.xlane.xlu0 %886  ;;  %v983_v42 = vpack.c.bf16 %v925_v43, %v924_v41 }
 0x3cc   :  { %1799 = vrcp.f32 %v887_v45  ;;  %v1748_v45 = vld [vmem:[#allocation10 + $0x8] sm:$0xff]  }
 0x3cd   :  { %1647 = vmatmul.mubr.msk.bf16.vlgmr.msra.gmra.mrb[24].mxu0 %vm761_vm3, %v983_v42  ;;  %v1792_v49 = vpop.eup %1791  ;;  %1801 = vrcp.f32 %v890_v44 }
 0x3ce   :  { %v896_v50 = vpop.xlane.xlu1 %895  ;;  %1657 = vmatpush3.bf16.msra.mxu0 %v1082_v21  ;;  %1658 = vmatprep.mubr.msk.bf16.mxu0 %vm1963_vm1, %v1962_v16  ;;  %v927_v34 = vmul.f32 %v1792_v49, %v2298_v51  ;;  %v1794_v55 = vpop.eup %1793 }
 0x3cf   :  { %v893_v53 = vpop.xlane.xlu0 %892  ;;  %1668 = vmatprep.subr.bf16.mxu0 %v1962_v16  ;;  %v928_v60 = vmul.f32 %v1794_v55, %v2296_v47 }
 0x3d0   :  { %1803 = vrcp.f32 %v893_v53  ;;  %v1032_v56 = vpack.c.bf16 %v927_v34, %v926_v24 }
 0x3d1   :  { %1805 = vrcp.f32 %v896_v50 }
 0x3d2   :  { %v1796_v46 = vpop.eup %1795  ;;  %v902_v48 = vpop.xlane.xlu1 %901  ;;  %1653 = vmatmul.mubr.msk.bf16.vlgmr.msra.gmra.mrb[24].mxu1 %vm761_vm3, %v1032_v56 }
 0x3d3   :  { %v899_v57 = vpop.xlane.xlu0 %898  ;;  %v929_v63 = vmul.f32 %v1796_v46, %v2306_v59  ;;  %v1798_v1 = vpop.eup %1797  ;;  %1663 = vmatpush3.bf16.msra.mxu1 %v2152_v61  ;;  %1664 = vmatprep.mubr.msk.bf16.mxu1 %vm1963_vm1, %v1962_v16 }
 0x3d4   :  { %1807 = vrcp.f32 %v899_v57  ;;  %1674 = vmatprep.subr.bf16.mxu1 %v1962_v16  ;;  %v930_v3 = vmul.f32 %v1798_v1, %v2308_v0 }
 0x3d5   :  { %1809 = vrcp.f32 %v902_v48  ;;  %v1080_v39 = vpack.c.bf16 %v929_v63, %v928_v60 }
 0x3d6   :  { %v1800_v51 = vpop.eup %1799  ;;  %v1303_v17 = vpop.permute.xlu1 %1302 }
 0x3d7   :  { %v905_v2 = vpop.xlane.xlu0 %904  ;;  %v931_v47 = vmul.f32 %v1800_v51, %v2318_v62  ;;  %1659 = vmatmul.mubr.msk.bf16.vlgmr.msra.gmra.mrb[28].mxu0 %vm761_vm3, %v1080_v39  ;;  %v1802_v59 = vpop.eup %1801 }
 0x3d8   :  { %1811 = vrcp.f32 %v905_v2  ;;  %1669 = vmatpush3.bf16.msra.mxu0 %v2348_v25  ;;  %1670 = vmatprep.mubr.msk.bf16.mxu0 %vm1963_vm1, %v1962_v16  ;;  %v932_v6 = vmul.f32 %v1802_v59, %v2315_v4 }
 0x3d9   :  { %v1159_v61 = vpack.c.bf16 %v931_v47, %v930_v3  ;;  %1680 = vmatprep.subr.bf16.mxu0 %v1962_v16 }
 0x3da   :  { %v1804_v52 = vpop.eup %1803 }
 0x3db   :  { %v1255_v54 = vpop.permute.xlu0 %1254  ;;  %v933_v0 = vmul.f32 %v1804_v52, %v2324_v9  ;;  %1665 = vmatmul.mubr.msk.bf16.vlgmr.msra.gmra.mrb[28].mxu1 %vm761_vm3, %v1159_v61  ;;  %v1806_v62 = vpop.eup %1805 }
 0x3dc   :  { %1675 = vmatpush3.bf16.msra.mxu1 %v1255_v54  ;;  %1676 = vmatprep.mubr.msk.bf16.mxu1 %vm1963_vm1, %v1962_v16  ;;  %v934_v12 = vmul.f32 %v1806_v62, %v2326_v10 }
 0x3dd   :  { %v1204_v8 = vpack.c.bf16 %v933_v0, %v932_v6  ;;  %1686 = vmatprep.subr.bf16.mxu1 %v1747_v36 }
 0x3de   :  { %v1808_v58 = vpop.eup %1807 }
 0x3df   :  { %v1810_v11 = vpop.eup %1809  ;;  %v935_v15 = vmul.f32 %v1808_v58, %v2334_v14  ;;  %1671 = vmatmul.mubr.msk.bf16.vlgmr.msra.gmra.mrb[32].mxu0 %vm761_vm3, %v1204_v8 }
 0x3e0   :  { %1681 = vmatpush3.bf16.msra.mxu0 %v1303_v17  ;;  %1682 = vmatprep.mubr.msk.bf16.mxu0 %vm1963_vm1, %v1962_v16  ;;  %v936_v20 = vmul.f32 %v1810_v11, %v2332_v13 }
 0x3e1   :  { %v1253_v9 = vpack.c.bf16 %v935_v15, %v934_v12 }
 0x3e2   :  { %v1812_v4 = vpop.eup %1811 }
 0x3e3   :  { %v937_v21 = vmul.f32 %v1812_v4, %v2340_v18  ;;  %1677 = vmatmul.mubr.msk.bf16.vlgmr.msra.gmra.mrb[32].mxu1 %vm761_vm3, %v1253_v9 }
 0x3e4   :  { %1687 = vmatpush3.bf16.msra.mxu1 %v1747_v36 }
 0x3e5   :  { %v1301_v23 = vpack.c.bf16 %v937_v21, %v936_v20  ;;  %1688 = vmatprep.subr.bf16.mxu1 %v1748_v45 }
 0x3e7   :  { %1683 = vmatmul.mubr.msk.bf16.vlgmr.msra.gmra.mrb[36].mxu0 %vm761_vm3, %v1301_v23 }
 0x3e8   :  { %1689 = vmatpush3.bf16.msra.mxu1 %v1748_v45 }
 0x453   :  { %v976_v10 = vpop.f32.mrb[20].mxu1 }
 0x454   :  { %v1642_v14 = vpop.f32.mrb[21].mxu1 }
 0x455   :  { %v979_v25 = vpop.f32.mrb[22].mxu1 }
 0x456   :  { %v1643_v19 = vpop.f32.mrb[23].mxu1 }
 0x4a0   :  { %v1025_v26 = vpop.f32.mrb[24].mxu0 }
 0x4a1   :  { %v1648_v27 = vpop.f32.mrb[25].mxu0 }
 0x4a2   :  { %v1028_v29 = vpop.f32.mrb[26].mxu0 }
 0x4a3   :  { %v1711_v22 = vpack.i.bf16 %v1028_v29, %v1025_v26  ;;  %v1649_v16 = vpop.f32.mrb[27].mxu0 }
 0x4a4   :  { %v1513_v16 = vld [vmem:[%s2439_s9] ss:$0 sm:$0xff]  ;;  %s1923_s9 = scalar_lea.vmem %s1469_s12, 512 }
 0x4a5   :  { %1712 = vrot.lane.b32.xlu0 %v1711_v22, %s1955_s24  ;;  %v1073_v31 = vpop.f32.mrb[24].mxu1  ;;  %p1924_p12 = scmp.ne.s32.totalorder %s1469_s12, %s1923_s9  ;;  %p1929_p0 = scmp.lt.s32.totalorder %s1923_s9, %s1923_s9 }
 0x4a6   :  { %v1654_v13 = vpop.f32.mrb[25].mxu1 }
 0x4a7   :  { %v1076_v32 = vpop.f32.mrb[26].mxu1  ;;  %p1930_p1 = por %p1929_p0, %p1928_p13 }
 0x4a8   :  { %v1716_v18 = vpack.i.bf16 %v1076_v32, %v1073_v31  ;;  %v1655_v33 = vpop.f32.mrb[27].mxu1 }
 0x4a9   :  { %p1931_p2 = pnand %p1930_p1, %p1924_p12 }
 0x4aa   :  { %v1121_v35 = vpop.f32.mrb[28].mxu0  ;;  %1717 = vrot.lane.b32.xlu1 %v1716_v18, %s1967_s7 }
 0x4ab   :  { %v1660_v28 = vpop.f32.mrb[29].mxu0 }
 0x4ac   :  { %v1124_v30 = vpop.f32.mrb[30].mxu0 }
 0x4ad   :  { %v1721_v37 = vpack.i.bf16 %v1124_v30, %v1121_v35  ;;  %v1661_v5 = vpop.f32.mrb[31].mxu0 }
 0x4ae   :  { %v1197_v7 = vpop.f32.mrb[28].mxu1 }
 0x4af   :  { %1722 = vrot.lane.b32.xlu1 %v1721_v37, %s1968_s0  ;;  %v1666_v38 = vpop.f32.mrb[29].mxu1 }
 0x4b0   :  { %v1200_v41 = vpop.f32.mrb[30].mxu1 }
 0x4b1   :  { %v1667_v43 = vpop.f32.mrb[31].mxu1 }
 0x4b2   :  { %v1246_v44 = vpop.f32.mrb[32].mxu0 }
 0x4b3   :  { %v1672_v42 = vpop.f32.mrb[33].mxu0 }
 0x4b4   :  { %v1249_v40 = vpop.f32.mrb[34].mxu0 }
 0x4b5   :  { %v1726_v49 = vpack.i.bf16 %v1249_v40, %v1246_v44  ;;  %v1673_v50 = vpop.f32.mrb[35].mxu0 }
 0x4b6   :  { %v1294_v53 = vpop.f32.mrb[32].mxu1 }
 0x4b7   :  { %1727 = vrot.lane.b32.xlu0 %v1726_v49, %s1955_s24  ;;  %v1678_v24 = vpop.f32.mrb[33].mxu1 }
 0x4b8   :  { %v1297_v34 = vpop.f32.mrb[34].mxu1 }
 0x4b9   :  { %v1731_v55 = vpack.i.bf16 %v1297_v34, %v1294_v53  ;;  %v1679_v56 = vpop.f32.mrb[35].mxu1 }
 0x4ba   :  { %v1342_v46 = vpop.f32.mrb[36].mxu0 }
 0x4bb   :  { %v1684_v48 = vpop.f32.mrb[37].mxu0  ;;  %1732 = vrot.lane.b32.xlu0 %v1731_v55, %s1967_s7 }
 0x4bc   :  { %v1345_v57 = vpop.f32.mrb[38].mxu0 }
 0x4bd   :  { %v1736_v60 = vpack.i.bf16 %v1345_v57, %v1342_v46  ;;  %v1685_v63 = vpop.f32.mrb[39].mxu0 }
 0x4bf   :  { %1737 = vrot.lane.b32.xlu1 %v1736_v60, %s1968_s0 }
 0x517   :  { %v1713_v1 = vpop.permute.xlu0 %1712 }
 0x518   :  { %v1715_v51 = vunpack.i.h.bf16 %v1713_v1  ;;  %v1714_v2 = vunpack.i.l.bf16 %v1713_v1 }
 0x51a   :  { %v1152_v61 = vsel %vm356_vm2, %v976_v10, %v1714_v2  ;;  %v1153_v52 = vsel %vm356_vm2, %v979_v25, %v1715_v51 }
 0x51c   :  { %v1718_v39 = vpop.permute.xlu1 %1717 }
 0x51d   :  { %v1720_v3 = vunpack.i.h.bf16 %v1718_v39  ;;  %v1719_v47 = vunpack.i.l.bf16 %v1718_v39 }
 0x51f   :  { %v1155_v0 = vsel %vm761_vm3, %v1153_v52, %v1720_v3  ;;  %v1154_v62 = vsel %vm761_vm3, %v1152_v61, %v1719_v47 }
 0x521   :  { %v1723_v59 = vpop.permute.xlu1 %1722 }
 0x522   :  { %v1725_v54 = vunpack.i.h.bf16 %v1723_v59  ;;  %v1724_v6 = vunpack.i.l.bf16 %v1723_v59 }
 0x524   :  { %v1157_v8 = vsel %vm1156_vm4, %v1154_v62, %v1724_v6  ;;  %v1158_v58 = vsel %vm1156_vm4, %v1155_v0, %v1725_v54 }
 0x525   :  { %v1379_v11 = vpack.c.bf16 %v1158_v58, %v1157_v8 }
 0x527   :  { %1690 = vmatprep.mubr.msk.bf16.mxu1 %vm140_vm0, %v1379_v11 }
 0x529   :  { %v1728_v12 = vpop.permute.xlu0 %1727 }
 0x52a   :  { %v1730_v17 = vunpack.i.h.bf16 %v1728_v12  ;;  %v1729_v4 = vunpack.i.l.bf16 %v1728_v12 }
 0x52c   :  { %v1373_v23 = vsel %vm356_vm2, %v1197_v7, %v1729_v4  ;;  %v1374_v10 = vsel %vm356_vm2, %v1200_v41, %v1730_v17 }
 0x52d   :  { %v1733_v15 = vpop.permute.xlu0 %1732 }
 0x52e   :  { %v1735_v9 = vunpack.i.h.bf16 %v1733_v15  ;;  %v1734_v20 = vunpack.i.l.bf16 %v1733_v15 }
 0x530   :  { %v1376_v19 = vsel %vm761_vm3, %v1374_v10, %v1735_v9  ;;  %v1375_v26 = vsel %vm761_vm3, %v1373_v23, %v1734_v20 }
 0x531   :  { %v1738_v21 = vpop.permute.xlu1 %1737 }
 0x532   :  { %v1740_v14 = vunpack.i.h.bf16 %v1738_v21  ;;  %v1739_v25 = vunpack.i.l.bf16 %v1738_v21 }
 0x534   :  { %v1377_v27 = vsel %vm1156_vm4, %v1375_v26, %v1739_v25  ;;  %v1378_v29 = vsel %vm1156_vm4, %v1376_v19, %v1740_v14 }
 0x535   :  { %v1380_v22 = vpack.c.bf16 %v1378_v29, %v1377_v27 }
 0x537   :  { %1691 = vmatmul.mubr.msk.bf16.vlgmr.msra.gmra.mrb[36].mxu1 %vm140_vm0, %v1380_v22 }
 0x60a   :  { %v1692_v31 = vpop.f32.mrb[36].mxu1 }
 0x60b   :  { %v1453_v13 = vadd.f32 %v1692_v31, %v1513_v16  ;;  %v1444_v32 = vpop.f32.mrb[37].mxu1 }
 0x60c   :  { %v1445_v18 = vadd.f32 %v1513_v16, %v1444_v32  ;;  %v1693_v33 = vpop.f32.mrb[38].mxu1 }
 0x60d   :  { %1461 = vst.msk [vmem:[#allocation11 + $0x10] sm:$0xff] %vm140_vm0, %v1453_v13  ;;  %v1456_v35 = vadd.f32 %v1693_v33, %v1513_v16  ;;  %v1447_v28 = vpop.f32.mrb[39].mxu1 }
 0x60e   :  { %1459 = vst.msk [vmem:[#allocation11] sm:$0xff] %vm140_vm0, %v1445_v18  ;;  %v1448_v30 = vadd.f32 %v1513_v16, %v1447_v28 }
 0x60f   :  { %1462 = vst.msk [vmem:[#allocation11 + $0x18] sm:$0xff] %vm140_vm0, %v1456_v35 }
 0x610   :  { %1460 = vst.msk [vmem:[#allocation11 + $0x8] sm:$0xff] %vm140_vm0, %v1448_v30 }
 0x611   :  { %1934 = shalt.err (!%p1931_p2)
}
 0x612   :  { %s1935_s28 = scalar_lea.hbm %s2440_s10, 512 }
 0x613   :  { %p1936_p3 = scmp.ne.s32.totalorder %s2440_s10, %s1935_s28  ;;  %p1939_p4 = scmp.lt.u32.totalorder %s1935_s28, %s2440_s10 }
 0x615   :  { %p1941_p5 = pnand %p1939_p4, %p1936_p3 }
 0x617   :  { %1944 = shalt.err (!%p1941_p5)
}
 0x618   :  { %1474 = dma.vmem_to_hbm [thread:$0]  %s1469_s12, 512, %s2440_s10, [#allocation4], %s1954_s23, %s1954_s23, %s1955_s24  }
 0x619   :  { %1951 = dma.done.wait [#allocation4], 512  }
 0x61a   :  { %1952 = vsyncadd [#allocation4], 4294966784 }
 0x61b   :  { %1478 = vsyncpa [#allocation3], 1 }
 0x61c   :  { %1479 = vsyncpa [#allocation6], 1 }
 0x61d   :  { %1480 = vsyncpa [#allocation9], 1 }
 0x61e   :  { %1481 = vsyncpa [#allocation4], 1 }

</bundles_post_ra>
